<compile_context>
chip_gen: v7x
topology: tpu7x:2x2x1
jax: 0.10.0
libtpu: 0.0.40
codegen_flags: <defaults>
</compile_context>

<pallas_src>
import jax
import jax.numpy as jnp
from jax.experimental import pallas as pl
from jax.experimental.pallas import tpu as pltpu


def _round_up(x, m):
    return (x + m - 1) // m * m


def _down_kernel(xm_ref, xh_ref, w1_ref, s1_ref, b1_ref, w2_ref, s2_ref, b2_ref, out_ref):
    # xm_ref : [NB, TB, 2, W2, 2*C1]    bf16  pooled-row block rb (pre-split 2x2 windows)
    # xh_ref : [NB, 1, 4, 2, W2, 2*C1]  bf16  halo rows rb*TB-2, rb*TB-1, rb*TB+TB, rb*TB+TB+1
    # w1_ref : [9*C1, C2] bf16 ; w2_ref : [9*C2, C2] bf16   (rows ordered kh-major, kw, cin)
    # s*/b*  : [1, C2] f32   folded conv-bias + BN(eval) scale / bias
    # out_ref: [NB, TB, W2, C2] bf16
    NB, TB, _, W2, two_c1 = xm_ref.shape
    C1 = two_c1 // 2
    C2 = out_ref.shape[-1]
    rb = pl.program_id(1)
    last_rb = pl.num_programs(1) - 1

    # ---- 2x2 max pool: plane max over the H-pair, lane-slice max over the W-pair ----
    def pool(t):                                     # [NB, R, 2, W2, 2*C1] -> [NB, R, W2, C1]
        m = jnp.maximum(t[:, :, 0], t[:, :, 1])
        return jnp.maximum(m[..., :C1], m[..., C1:])

    pm = pool(xm_ref[...])                           # [NB, TB, W2, C1]
    ph = pool(xh_ref[:, 0])                          # [NB, 4,  W2, C1]
    # pooled window covering global pooled rows rb*TB-2 .. rb*TB+TB+1 (halo rows are zero
    # whenever they fall outside the image -> exactly conv1's zero padding)
    win = jnp.concatenate([ph[:, :2], pm, ph[:, 2:]], axis=1)    # [NB, TB+4, W2, C1]

    def conv3x3_bn_relu(src, w_ref, s_ref, b_ref, n_rows):
        # src: [NB, n_rows+2, W2, C] bf16 (one halo row each side)
        # returns ReLU(conv3x3(src)*scale + bias) on the interior rows: [NB, n_rows, W2, C2] f32
        C = src.shape[-1]
        zcol = jnp.zeros((NB, n_rows, 1, C), src.dtype)
        M = NB * n_rows * W2
        acc = jnp.zeros((M, C2), jnp.float32)
        for kh in range(3):                          # 3 row-group matmuls, K = 3*C each
            rows = src[:, kh:kh + n_rows]            # tap row (h + kh - 1)
            patch = jnp.concatenate(
                [jnp.concatenate([zcol, rows[:, :, :-1]], axis=2),   # tap col w-1
                 rows,                                               # tap col w
                 jnp.concatenate([rows[:, :, 1:], zcol], axis=2)],   # tap col w+1
                axis=-1).reshape(M, 3 * C)
            acc += jnp.dot(patch, w_ref[kh * 3 * C:(kh + 1) * 3 * C, :],
                           preferred_element_type=jnp.float32)
        y = jnp.maximum(acc * s_ref[...] + b_ref[...], 0.0)
        return y.reshape(NB, n_rows, W2, C2)

    # conv1 on rows rb*TB-1 .. rb*TB+TB (one recomputed halo row on each side for conv2)
    h1 = conv3x3_bn_relu(win, w1_ref, s1_ref, b1_ref, TB + 2)
    # conv2's zero padding: h1 halo rows that fall outside the image must be exactly zero
    # (conv1 of zero input is ReLU(folded bias), not zero).  Only the first / last halo row
    # can be out of range because TB divides H2.
    top = h1[:, :1] * jnp.where(rb > 0, 1.0, 0.0)
    bot = h1[:, -1:] * jnp.where(rb < last_rb, 1.0, 0.0)
    h1 = jnp.concatenate([top, h1[:, 1:-1], bot], axis=1)

    h2 = conv3x3_bn_relu(h1.astype(jnp.bfloat16), w2_ref, s2_ref, b2_ref, TB)
    out_ref[...] = h2.astype(out_ref.dtype)          # bf16 writeback


@jax.jit
def down_pallas(x_nchw, params):
    """x_nchw: [N, Cin, H, W] float32 -> [N, Cout, H//2, W//2] float32."""
    eps = 1e-5
    N, Cin, H, W = x_nchw.shape
    assert H % 2 == 0 and W % 2 == 0, "MaxPool2d(2) path assumes even H and W"
    H2, W2 = H // 2, W // 2
    Cout = params["w1"].shape[0]
    C1 = _round_up(Cin, 8)      # input channels: sublane-aligned only (no 128x blowup)
    C2 = _round_up(Cout, 128)   # output channels: lane-dense (MXU N dim, unmasked stores)

    # ---- chip-aware VMEM budget (v7x: 64 MiB/TC, v5e/v6e: 128 MiB) ----
    try:
        vmem_cap = int(pltpu.get_tpu_info().vmem_capacity_bytes)
    except Exception:  # conservative default if the query is unavailable
        vmem_cap = 64 * 1024 * 1024
    vmem_limit = min(int(0.80 * vmem_cap), 100 * 1024 * 1024)
    budget = int(0.6 * vmem_limit)

    def vmem_est(tb, nb):
        bf = 2
        in_row = nb * 2 * W2 * 2 * C1 * bf                  # one pooled row of raw input
        out_row = nb * W2 * C2 * bf
        blocks = 2 * ((tb + 4) * in_row + tb * out_row)     # double-buffered pipeline blocks
        weights = 2 * bf * (9 * C1 * C2 + 9 * C2 * C2) + 8 * 4 * C2
        tmp = nb * ((tb + 4) * W2 * C1 * bf                       # pooled window
                    + (tb + 2) * W2 * 3 * max(C1, C2) * bf        # one row-group patch
                    + (tb + 2) * W2 * C2 * (4 + 4 + bf)           # conv1 acc + h1 f32/bf16
                    + tb * W2 * C2 * (4 + 4))                     # conv2 acc + result
        return blocks + weights + tmp

    # rows per block: largest divisor of H2 (<= 64) that fits the budget
    TB = 1
    for cand in sorted([d for d in range(1, H2 + 1) if H2 % d == 0 and d <= 64],
                       reverse=True):
        if vmem_est(cand, 1) <= budget:
            TB = cand
            break
    RB = H2 // TB
    # tiny images: pack several images per grid step to keep the MXU M-stream long
    NB = 1
    if TB == H2:
        for cand in range(min(N, max(1, 1024 // (TB * W2))), 0, -1):
            if N % cand == 0 and vmem_est(TB, cand) <= budget:
                NB = cand
                break

    # NCHW -> NHWC, minimal channel pad, bf16; metadata-only reshape exposing the 2x2
    # pooling window (H-pair plane, W-pair in the lane dim).  No xwin materialization.
    x = jnp.transpose(x_nchw, (0, 2, 3, 1))
    x = jnp.pad(x, ((0, 0), (0, 0), (0, 0), (0, C1 - Cin))).astype(jnp.bfloat16)
    x5 = x.reshape(N, H2, 2, W2, 2 * C1)
    # per-block halo rows (2 above + 2 below, zero outside the image): [N, RB, 4, 2, W2, 2*C1]
    xp = jnp.pad(x5, ((0, 0), (2, 2), (0, 0), (0, 0), (0, 0)))
    hidx = jnp.arange(RB)[:, None] * TB + jnp.array([0, 1, TB + 2, TB + 3])[None, :]
    xhalo = xp[:, hidx]

    # conv weights: OIHW -> [kh, kw, Cin, Cout] -> channel-padded -> [9*Cpad_in, C2] bf16
    def prep_w(w_oihw, cin, cin_pad):
        w = jnp.transpose(w_oihw, (2, 3, 1, 0))
        w = jnp.pad(w, ((0, 0), (0, 0), (0, cin_pad - cin), (0, C2 - Cout)))
        return w.reshape(9 * cin_pad, C2).astype(jnp.bfloat16)

    w1 = prep_w(params["w1"], Cin, C1)
    w2 = prep_w(params["w2"], Cout, C2)

    # fold conv bias + BN(eval) into per-channel scale / bias (zero on padded channels)
    def fold(b_conv, gamma, beta, mean, var):
        scale = gamma / jnp.sqrt(var + eps)
        bias = beta + scale * (b_conv - mean)
        scale = jnp.pad(scale, (0, C2 - Cout)).reshape(1, C2).astype(jnp.float32)
        bias = jnp.pad(bias, (0, C2 - Cout)).reshape(1, C2).astype(jnp.float32)
        return scale, bias

    s1, bb1 = fold(params["b1"], params["g1"], params["be1"], params["m1"], params["v1"])
    s2, bb2 = fold(params["b2"], params["g2"], params["be2"], params["m2"], params["v2"])

    out_nhwc = pl.pallas_call(
        _down_kernel,
        out_shape=jax.ShapeDtypeStruct((N, H2, W2, C2), jnp.bfloat16),
        grid=(N // NB, RB),
        in_specs=[
            pl.BlockSpec((NB, TB, 2, W2, 2 * C1), lambda n, rb: (n, rb, 0, 0, 0)),
            pl.BlockSpec((NB, 1, 4, 2, W2, 2 * C1), lambda n, rb: (n, rb, 0, 0, 0, 0)),
            # grid-constant operands: constant index_map -> only DMA'd once by the pipeline
            pl.BlockSpec((9 * C1, C2), lambda n, rb: (0, 0)),
            pl.BlockSpec((1, C2), lambda n, rb: (0, 0)),
            pl.BlockSpec((1, C2), lambda n, rb: (0, 0)),
            pl.BlockSpec((9 * C2, C2), lambda n, rb: (0, 0)),
            pl.BlockSpec((1, C2), lambda n, rb: (0, 0)),
            pl.BlockSpec((1, C2), lambda n, rb: (0, 0)),
        ],
        out_specs=pl.BlockSpec((NB, TB, W2, C2), lambda n, rb: (n, rb, 0, 0)),
        compiler_params=pltpu.CompilerParams(
            dimension_semantics=("parallel", "parallel"),
            vmem_limit_bytes=vmem_limit,
        ),
    )(x5, xhalo, w1, s1, bb1, w2, s2, bb2)

    # drop channel padding, NHWC -> NCHW, back to f32 (PyTorch output convention)
    return jnp.transpose(out_nhwc[..., :Cout], (0, 3, 1, 2)).astype(jnp.float32)


def down_reference(x_nchw, params):
    """Pure-JAX f32 reference: MaxPool2d(2) -> (conv3x3 + BN(eval) + ReLU) x 2."""
    eps = 1e-5
    pooled = jax.lax.reduce_window(x_nchw, -jnp.inf, jax.lax.max,
                                   (1, 1, 2, 2), (1, 1, 2, 2), "VALID")

    def conv_bn_relu(x, w, b, g, be, m, v):
        y = jax.lax.conv_general_dilated(
            x, w, (1, 1), ((1, 1), (1, 1)),
            dimension_numbers=("NCHW", "OIHW", "NCHW"))
        y = y + b[None, :, None, None]
        y = g[None, :, None, None] * (y - m[None, :, None, None]) \
            / jnp.sqrt(v[None, :, None, None] + eps) + be[None, :, None, None]
        return jnp.maximum(y, 0.0)

    y = conv_bn_relu(pooled, params["w1"], params["b1"], params["g1"],
                     params["be1"], params["m1"], params["v1"])
    y = conv_bn_relu(y, params["w2"], params["b2"], params["g2"],
                     params["be2"], params["m2"], params["v2"])
    return y


def make_params(key, in_channels, out_channels):
    ks = jax.random.split(key, 10)
    return {
        # conv weights in PyTorch OIHW layout
        "w1": 0.1 * jax.random.normal(ks[0], (out_channels, in_channels, 3, 3), jnp.float32),
        "b1": 0.05 * jax.random.normal(ks[1], (out_channels,), jnp.float32),
        "w2": 0.1 * jax.random.normal(ks[2], (out_channels, out_channels, 3, 3), jnp.float32),
        "b2": 0.05 * jax.random.normal(ks[3], (out_channels,), jnp.float32),
        # BatchNorm (eval mode) parameters / running stats
        "g1": 1.0 + 0.1 * jax.random.normal(ks[4], (out_channels,), jnp.float32),
        "be1": 0.1 * jax.random.normal(ks[5], (out_channels,), jnp.float32),
        "m1": 0.1 * jax.random.normal(ks[6], (out_channels,), jnp.float32),
        "v1": 1.0 + 0.1 * jnp.abs(jax.random.normal(ks[7], (out_channels,), jnp.float32)),
        "g2": 1.0 + 0.1 * jax.random.normal(ks[8], (out_channels,), jnp.float32),
        "be2": 0.1 * jax.random.normal(ks[9], (out_channels,), jnp.float32),
        "m2": jnp.linspace(-0.1, 0.1, out_channels, dtype=jnp.float32),
        "v2": 1.0 + jnp.linspace(0.0, 0.2, out_channels, dtype=jnp.float32),
    }


if __name__ == "__main__":
    key = jax.random.PRNGKey(0)
    k_x, k_p = jax.random.split(key)

    N, Cin, H, W = 2, 4, 16, 16
    Cout = 8
    x = jax.random.normal(k_x, (N, Cin, H, W), jnp.float32)
    params = make_params(k_p, Cin, Cout)

    out = down_pallas(x, params)
    out = jax.block_until_ready(out)

    ref = down_reference(x, params)
    assert out.shape == (N, Cout, H // 2, W // 2), out.shape
    # bf16 MXU operands + bf16 h1 requant + bf16 output writeback vs. an all-f32 reference.
    assert jnp.allclose(out, ref, atol=4e-2, rtol=4e-2), \
        float(jnp.max(jnp.abs(out - ref)))

    print("KERNEL_OK")
</pallas_src>

<mosaic_0001>
module attributes {stable_mosaic.version = 11 : i64} {
  func.func @_down_kernel(%arg0: i32, %arg1: i32, %arg2: memref<2x8x2x8x16xbf16, #tpu.memory_space<vmem>>, %arg3: memref<2x1x4x2x8x16xbf16, #tpu.memory_space<vmem>>, %arg4: memref<72x128xbf16, #tpu.memory_space<vmem>>, %arg5: memref<1x128xf32, #tpu.memory_space<vmem>>, %arg6: memref<1x128xf32, #tpu.memory_space<vmem>>, %arg7: memref<1152x128xbf16, #tpu.memory_space<vmem>>, %arg8: memref<1x128xf32, #tpu.memory_space<vmem>>, %arg9: memref<1x128xf32, #tpu.memory_space<vmem>>, %arg10: memref<2x8x8x128xbf16, #tpu.memory_space<vmem>>) attributes {dimension_semantics = [#tpu.dimension_semantics<parallel>, #tpu.dimension_semantics<parallel>], iteration_bounds = array<i64: 1, 1>, scalar_prefetch = 0 : i64, scratch_operands = 0 : i64, tpu.core_type = #tpu.core_type<tc>, window_params = [{transform_indices = @transform_0, window_bounds = array<i64: 2, 8, 2, 8, 16>}, {transform_indices = @transform_1, window_bounds = array<i64: 2, 1, 4, 2, 8, 16>}, {pipeline_mode = #tpu.pipeline_mode<synchronous>, transform_indices = @transform_2, window_bounds = array<i64: 72, 128>}, {pipeline_mode = #tpu.pipeline_mode<synchronous>, transform_indices = @transform_3, window_bounds = array<i64: 1, 128>}, {pipeline_mode = #tpu.pipeline_mode<synchronous>, transform_indices = @transform_4, window_bounds = array<i64: 1, 128>}, {pipeline_mode = #tpu.pipeline_mode<synchronous>, transform_indices = @transform_5, window_bounds = array<i64: 1152, 128>}, {pipeline_mode = #tpu.pipeline_mode<synchronous>, transform_indices = @transform_6, window_bounds = array<i64: 1, 128>}, {pipeline_mode = #tpu.pipeline_mode<synchronous>, transform_indices = @transform_7, window_bounds = array<i64: 1, 128>}, {transform_indices = @transform_8, window_bounds = array<i64: 2, 8, 8, 128>}]} {
    %c0 = arith.constant 0 : index
    %c0_0 = arith.constant 0 : index
    %c0_1 = arith.constant 0 : index
    %c0_2 = arith.constant 0 : index
    %c0_3 = arith.constant 0 : index
    %0 = vector.load %arg2[%c0, %c0_0, %c0_1, %c0_2, %c0_3] : memref<2x8x2x8x16xbf16, #tpu.memory_space<vmem>>, vector<2x8x2x8x16xbf16>
    %1 = vector.extract_strided_slice %0 {offsets = [0, 0, 0, 0, 0], sizes = [2, 8, 1, 8, 16], strides = [1, 1, 1, 1, 1]} : vector<2x8x2x8x16xbf16> to vector<2x8x1x8x16xbf16>
    %2 = vector.shape_cast %1 : vector<2x8x1x8x16xbf16> to vector<2x8x8x16xbf16>
    %3 = vector.extract_strided_slice %0 {offsets = [0, 0, 1, 0, 0], sizes = [2, 8, 1, 8, 16], strides = [1, 1, 1, 1, 1]} : vector<2x8x2x8x16xbf16> to vector<2x8x1x8x16xbf16>
    %4 = vector.shape_cast %3 : vector<2x8x1x8x16xbf16> to vector<2x8x8x16xbf16>
    %5 = arith.maximumf %2, %4 : vector<2x8x8x16xbf16>
    %6 = vector.extract_strided_slice %5 {offsets = [0, 0, 0, 0], sizes = [2, 8, 8, 8], strides = [1, 1, 1, 1]} : vector<2x8x8x16xbf16> to vector<2x8x8x8xbf16>
    %7 = vector.extract_strided_slice %5 {offsets = [0, 0, 0, 8], sizes = [2, 8, 8, 8], strides = [1, 1, 1, 1]} : vector<2x8x8x16xbf16> to vector<2x8x8x8xbf16>
    %8 = arith.maximumf %6, %7 : vector<2x8x8x8xbf16>
    %c0_4 = arith.constant 0 : index
    %c0_5 = arith.constant 0 : index
    %c0_6 = arith.constant 0 : index
    %c0_7 = arith.constant 0 : index
    %c0_8 = arith.constant 0 : index
    %c0_9 = arith.constant 0 : index
    %9 = vector.load %arg3[%c0_4, %c0_5, %c0_6, %c0_7, %c0_8, %c0_9] : memref<2x1x4x2x8x16xbf16, #tpu.memory_space<vmem>>, vector<2x1x4x2x8x16xbf16>
    %10 = vector.shape_cast %9 : vector<2x1x4x2x8x16xbf16> to vector<2x4x2x8x16xbf16>
    %11 = vector.extract_strided_slice %10 {offsets = [0, 0, 0, 0, 0], sizes = [2, 4, 1, 8, 16], strides = [1, 1, 1, 1, 1]} : vector<2x4x2x8x16xbf16> to vector<2x4x1x8x16xbf16>
    %12 = vector.shape_cast %11 : vector<2x4x1x8x16xbf16> to vector<2x4x8x16xbf16>
    %13 = vector.extract_strided_slice %10 {offsets = [0, 0, 1, 0, 0], sizes = [2, 4, 1, 8, 16], strides = [1, 1, 1, 1, 1]} : vector<2x4x2x8x16xbf16> to vector<2x4x1x8x16xbf16>
    %14 = vector.shape_cast %13 : vector<2x4x1x8x16xbf16> to vector<2x4x8x16xbf16>
    %15 = arith.maximumf %12, %14 : vector<2x4x8x16xbf16>
    %16 = vector.extract_strided_slice %15 {offsets = [0, 0, 0, 0], sizes = [2, 4, 8, 8], strides = [1, 1, 1, 1]} : vector<2x4x8x16xbf16> to vector<2x4x8x8xbf16>
    %17 = vector.extract_strided_slice %15 {offsets = [0, 0, 0, 8], sizes = [2, 4, 8, 8], strides = [1, 1, 1, 1]} : vector<2x4x8x16xbf16> to vector<2x4x8x8xbf16>
    %18 = arith.maximumf %16, %17 : vector<2x4x8x8xbf16>
    %19 = vector.extract_strided_slice %18 {offsets = [0, 0, 0, 0], sizes = [2, 2, 8, 8], strides = [1, 1, 1, 1]} : vector<2x4x8x8xbf16> to vector<2x2x8x8xbf16>
    %20 = vector.extract_strided_slice %18 {offsets = [0, 2, 0, 0], sizes = [2, 2, 8, 8], strides = [1, 1, 1, 1]} : vector<2x4x8x8xbf16> to vector<2x2x8x8xbf16>
    %21 = tpu.concatenate %19, %8, %20 in 1 : vector<2x2x8x8xbf16>, vector<2x8x8x8xbf16>, vector<2x2x8x8xbf16> -> vector<2x12x8x8xbf16>
    %cst = arith.constant 0.000000e+00 : bf16
    %22 = vector.broadcast %cst : bf16 to vector<2x10x1x8xbf16>
    %cst_10 = arith.constant 0.000000e+00 : f32
    %23 = vector.broadcast %cst_10 : f32 to vector<160x128xf32>
    %24 = vector.extract_strided_slice %21 {offsets = [0, 0, 0, 0], sizes = [2, 10, 8, 8], strides = [1, 1, 1, 1]} : vector<2x12x8x8xbf16> to vector<2x10x8x8xbf16>
    %25 = vector.extract_strided_slice %24 {offsets = [0, 0, 0, 0], sizes = [2, 10, 7, 8], strides = [1, 1, 1, 1]} : vector<2x10x8x8xbf16> to vector<2x10x7x8xbf16>
    %26 = tpu.concatenate %22, %25 in 2 : vector<2x10x1x8xbf16>, vector<2x10x7x8xbf16> -> vector<2x10x8x8xbf16>
    %27 = vector.extract_strided_slice %24 {offsets = [0, 0, 1, 0], sizes = [2, 10, 7, 8], strides = [1, 1, 1, 1]} : vector<2x10x8x8xbf16> to vector<2x10x7x8xbf16>
    %28 = tpu.concatenate %27, %22 in 2 : vector<2x10x7x8xbf16>, vector<2x10x1x8xbf16> -> vector<2x10x8x8xbf16>
    %29 = tpu.concatenate %26, %24, %28 in 3 : vector<2x10x8x8xbf16>, vector<2x10x8x8xbf16>, vector<2x10x8x8xbf16> -> vector<2x10x8x24xbf16>
    %30 = vector.shape_cast %29 : vector<2x10x8x24xbf16> to vector<160x24xbf16>
    %c0_11 = arith.constant 0 : index
    %c0_12 = arith.constant 0 : index
    %31 = vector.load %arg4[%c0_11, %c0_12] : memref<72x128xbf16, #tpu.memory_space<vmem>>, vector<24x128xbf16>
    %cst_13 = arith.constant dense<0.000000e+00> : vector<160x128xf32>
    %32 = tpu.matmul %30, %31, %cst_13 {dimension_numbers = #tpu.dot_dimension_numbers<[1], [0], [0], [1], [0, 0, 1, 1], [], []>} : vector<160x24xbf16>, vector<24x128xbf16>, vector<160x128xf32> -> vector<160x128xf32>
    %33 = arith.addf %23, %32 : vector<160x128xf32>
    %34 = vector.extract_strided_slice %21 {offsets = [0, 1, 0, 0], sizes = [2, 10, 8, 8], strides = [1, 1, 1, 1]} : vector<2x12x8x8xbf16> to vector<2x10x8x8xbf16>
    %35 = vector.extract_strided_slice %34 {offsets = [0, 0, 0, 0], sizes = [2, 10, 7, 8], strides = [1, 1, 1, 1]} : vector<2x10x8x8xbf16> to vector<2x10x7x8xbf16>
    %36 = tpu.concatenate %22, %35 in 2 : vector<2x10x1x8xbf16>, vector<2x10x7x8xbf16> -> vector<2x10x8x8xbf16>
    %37 = vector.extract_strided_slice %34 {offsets = [0, 0, 1, 0], sizes = [2, 10, 7, 8], strides = [1, 1, 1, 1]} : vector<2x10x8x8xbf16> to vector<2x10x7x8xbf16>
    %38 = tpu.concatenate %37, %22 in 2 : vector<2x10x7x8xbf16>, vector<2x10x1x8xbf16> -> vector<2x10x8x8xbf16>
    %39 = tpu.concatenate %36, %34, %38 in 3 : vector<2x10x8x8xbf16>, vector<2x10x8x8xbf16>, vector<2x10x8x8xbf16> -> vector<2x10x8x24xbf16>
    %40 = vector.shape_cast %39 : vector<2x10x8x24xbf16> to vector<160x24xbf16>
    %c24 = arith.constant 24 : index
    %c0_14 = arith.constant 0 : index
    %41 = vector.load %arg4[%c24, %c0_14] : memref<72x128xbf16, #tpu.memory_space<vmem>>, vector<24x128xbf16>
    %cst_15 = arith.constant dense<0.000000e+00> : vector<160x128xf32>
    %42 = tpu.matmul %40, %41, %cst_15 {dimension_numbers = #tpu.dot_dimension_numbers<[1], [0], [0], [1], [0, 0, 1, 1], [], []>} : vector<160x24xbf16>, vector<24x128xbf16>, vector<160x128xf32> -> vector<160x128xf32>
    %43 = arith.addf %33, %42 : vector<160x128xf32>
    %44 = vector.extract_strided_slice %21 {offsets = [0, 2, 0, 0], sizes = [2, 10, 8, 8], strides = [1, 1, 1, 1]} : vector<2x12x8x8xbf16> to vector<2x10x8x8xbf16>
    %45 = vector.extract_strided_slice %44 {offsets = [0, 0, 0, 0], sizes = [2, 10, 7, 8], strides = [1, 1, 1, 1]} : vector<2x10x8x8xbf16> to vector<2x10x7x8xbf16>
    %46 = tpu.concatenate %22, %45 in 2 : vector<2x10x1x8xbf16>, vector<2x10x7x8xbf16> -> vector<2x10x8x8xbf16>
    %47 = vector.extract_strided_slice %44 {offsets = [0, 0, 1, 0], sizes = [2, 10, 7, 8], strides = [1, 1, 1, 1]} : vector<2x10x8x8xbf16> to vector<2x10x7x8xbf16>
    %48 = tpu.concatenate %47, %22 in 2 : vector<2x10x7x8xbf16>, vector<2x10x1x8xbf16> -> vector<2x10x8x8xbf16>
    %49 = tpu.concatenate %46, %44, %48 in 3 : vector<2x10x8x8xbf16>, vector<2x10x8x8xbf16>, vector<2x10x8x8xbf16> -> vector<2x10x8x24xbf16>
    %50 = vector.shape_cast %49 : vector<2x10x8x24xbf16> to vector<160x24xbf16>
    %c48 = arith.constant 48 : index
    %c0_16 = arith.constant 0 : index
    %51 = vector.load %arg4[%c48, %c0_16] : memref<72x128xbf16, #tpu.memory_space<vmem>>, vector<24x128xbf16>
    %cst_17 = arith.constant dense<0.000000e+00> : vector<160x128xf32>
    %52 = tpu.matmul %50, %51, %cst_17 {dimension_numbers = #tpu.dot_dimension_numbers<[1], [0], [0], [1], [0, 0, 1, 1], [], []>} : vector<160x24xbf16>, vector<24x128xbf16>, vector<160x128xf32> -> vector<160x128xf32>
    %53 = arith.addf %43, %52 : vector<160x128xf32>
    %c0_18 = arith.constant 0 : index
    %c0_19 = arith.constant 0 : index
    %54 = vector.load %arg5[%c0_18, %c0_19] : memref<1x128xf32, #tpu.memory_space<vmem>>, vector<1x128xf32>
    %55 = vector.broadcast %54 : vector<1x128xf32> to vector<160x128xf32>
    %56 = arith.mulf %53, %55 : vector<160x128xf32>
    %c0_20 = arith.constant 0 : index
    %c0_21 = arith.constant 0 : index
    %57 = vector.load %arg6[%c0_20, %c0_21] : memref<1x128xf32, #tpu.memory_space<vmem>>, vector<1x128xf32>
    %58 = vector.broadcast %57 : vector<1x128xf32> to vector<160x128xf32>
    %59 = arith.addf %56, %58 : vector<160x128xf32>
    %cst_22 = arith.constant 0.000000e+00 : f32
    %60 = vector.broadcast %cst_22 : f32 to vector<160x128xf32>
    %61 = arith.maximumf %59, %60 : vector<160x128xf32>
    %62 = vector.shape_cast %61 : vector<160x128xf32> to vector<2x10x8x128xf32>
    %63 = vector.extract_strided_slice %62 {offsets = [0, 0, 0, 0], sizes = [2, 1, 8, 128], strides = [1, 1, 1, 1]} : vector<2x10x8x128xf32> to vector<2x1x8x128xf32>
    %c0_i32 = arith.constant 0 : i32
    %64 = arith.cmpi sgt, %arg1, %c0_i32 : i32
    %cst_23 = arith.constant 1.000000e+00 : f32
    %cst_24 = arith.constant 0.000000e+00 : f32
    %65 = arith.select %64, %cst_23, %cst_24 : f32
    %66 = vector.broadcast %65 : f32 to vector<2x1x8x128xf32>
    %67 = arith.mulf %63, %66 : vector<2x1x8x128xf32>
    %68 = vector.extract_strided_slice %62 {offsets = [0, 9, 0, 0], sizes = [2, 1, 8, 128], strides = [1, 1, 1, 1]} : vector<2x10x8x128xf32> to vector<2x1x8x128xf32>
    %c0_i32_25 = arith.constant 0 : i32
    %69 = arith.cmpi slt, %arg1, %c0_i32_25 : i32
    %cst_26 = arith.constant 1.000000e+00 : f32
    %cst_27 = arith.constant 0.000000e+00 : f32
    %70 = arith.select %69, %cst_26, %cst_27 : f32
    %71 = vector.broadcast %70 : f32 to vector<2x1x8x128xf32>
    %72 = arith.mulf %68, %71 : vector<2x1x8x128xf32>
    %73 = vector.extract_strided_slice %62 {offsets = [0, 1, 0, 0], sizes = [2, 8, 8, 128], strides = [1, 1, 1, 1]} : vector<2x10x8x128xf32> to vector<2x8x8x128xf32>
    %74 = tpu.concatenate %67, %73, %72 in 1 : vector<2x1x8x128xf32>, vector<2x8x8x128xf32>, vector<2x1x8x128xf32> -> vector<2x10x8x128xf32>
    %75 = arith.truncf %74 : vector<2x10x8x128xf32> to vector<2x10x8x128xbf16>
    %cst_28 = arith.constant 0.000000e+00 : bf16
    %76 = vector.broadcast %cst_28 : bf16 to vector<2x8x1x128xbf16>
    %cst_29 = arith.constant 0.000000e+00 : f32
    %77 = vector.broadcast %cst_29 : f32 to vector<128x128xf32>
    %78 = vector.extract_strided_slice %75 {offsets = [0, 0, 0, 0], sizes = [2, 8, 8, 128], strides = [1, 1, 1, 1]} : vector<2x10x8x128xbf16> to vector<2x8x8x128xbf16>
    %79 = vector.extract_strided_slice %78 {offsets = [0, 0, 0, 0], sizes = [2, 8, 7, 128], strides = [1, 1, 1, 1]} : vector<2x8x8x128xbf16> to vector<2x8x7x128xbf16>
    %80 = tpu.concatenate %76, %79 in 2 : vector<2x8x1x128xbf16>, vector<2x8x7x128xbf16> -> vector<2x8x8x128xbf16>
    %81 = vector.extract_strided_slice %78 {offsets = [0, 0, 1, 0], sizes = [2, 8, 7, 128], strides = [1, 1, 1, 1]} : vector<2x8x8x128xbf16> to vector<2x8x7x128xbf16>
    %82 = tpu.concatenate %81, %76 in 2 : vector<2x8x7x128xbf16>, vector<2x8x1x128xbf16> -> vector<2x8x8x128xbf16>
    %83 = tpu.concatenate %80, %78, %82 in 3 : vector<2x8x8x128xbf16>, vector<2x8x8x128xbf16>, vector<2x8x8x128xbf16> -> vector<2x8x8x384xbf16>
    %84 = vector.shape_cast %83 : vector<2x8x8x384xbf16> to vector<128x384xbf16>
    %c0_30 = arith.constant 0 : index
    %c0_31 = arith.constant 0 : index
    %85 = vector.load %arg7[%c0_30, %c0_31] : memref<1152x128xbf16, #tpu.memory_space<vmem>>, vector<384x128xbf16>
    %cst_32 = arith.constant dense<0.000000e+00> : vector<128x128xf32>
    %86 = tpu.matmul %84, %85, %cst_32 {dimension_numbers = #tpu.dot_dimension_numbers<[1], [0], [0], [1], [0, 0, 1, 1], [], []>} : vector<128x384xbf16>, vector<384x128xbf16>, vector<128x128xf32> -> vector<128x128xf32>
    %87 = arith.addf %77, %86 : vector<128x128xf32>
    %88 = vector.extract_strided_slice %75 {offsets = [0, 1, 0, 0], sizes = [2, 8, 8, 128], strides = [1, 1, 1, 1]} : vector<2x10x8x128xbf16> to vector<2x8x8x128xbf16>
    %89 = vector.extract_strided_slice %88 {offsets = [0, 0, 0, 0], sizes = [2, 8, 7, 128], strides = [1, 1, 1, 1]} : vector<2x8x8x128xbf16> to vector<2x8x7x128xbf16>
    %90 = tpu.concatenate %76, %89 in 2 : vector<2x8x1x128xbf16>, vector<2x8x7x128xbf16> -> vector<2x8x8x128xbf16>
    %91 = vector.extract_strided_slice %88 {offsets = [0, 0, 1, 0], sizes = [2, 8, 7, 128], strides = [1, 1, 1, 1]} : vector<2x8x8x128xbf16> to vector<2x8x7x128xbf16>
    %92 = tpu.concatenate %91, %76 in 2 : vector<2x8x7x128xbf16>, vector<2x8x1x128xbf16> -> vector<2x8x8x128xbf16>
    %93 = tpu.concatenate %90, %88, %92 in 3 : vector<2x8x8x128xbf16>, vector<2x8x8x128xbf16>, vector<2x8x8x128xbf16> -> vector<2x8x8x384xbf16>
    %94 = vector.shape_cast %93 : vector<2x8x8x384xbf16> to vector<128x384xbf16>
    %c384 = arith.constant 384 : index
    %c0_33 = arith.constant 0 : index
    %95 = vector.load %arg7[%c384, %c0_33] : memref<1152x128xbf16, #tpu.memory_space<vmem>>, vector<384x128xbf16>
    %cst_34 = arith.constant dense<0.000000e+00> : vector<128x128xf32>
    %96 = tpu.matmul %94, %95, %cst_34 {dimension_numbers = #tpu.dot_dimension_numbers<[1], [0], [0], [1], [0, 0, 1, 1], [], []>} : vector<128x384xbf16>, vector<384x128xbf16>, vector<128x128xf32> -> vector<128x128xf32>
    %97 = arith.addf %87, %96 : vector<128x128xf32>
    %98 = vector.extract_strided_slice %75 {offsets = [0, 2, 0, 0], sizes = [2, 8, 8, 128], strides = [1, 1, 1, 1]} : vector<2x10x8x128xbf16> to vector<2x8x8x128xbf16>
    %99 = vector.extract_strided_slice %98 {offsets = [0, 0, 0, 0], sizes = [2, 8, 7, 128], strides = [1, 1, 1, 1]} : vector<2x8x8x128xbf16> to vector<2x8x7x128xbf16>
    %100 = tpu.concatenate %76, %99 in 2 : vector<2x8x1x128xbf16>, vector<2x8x7x128xbf16> -> vector<2x8x8x128xbf16>
    %101 = vector.extract_strided_slice %98 {offsets = [0, 0, 1, 0], sizes = [2, 8, 7, 128], strides = [1, 1, 1, 1]} : vector<2x8x8x128xbf16> to vector<2x8x7x128xbf16>
    %102 = tpu.concatenate %101, %76 in 2 : vector<2x8x7x128xbf16>, vector<2x8x1x128xbf16> -> vector<2x8x8x128xbf16>
    %103 = tpu.concatenate %100, %98, %102 in 3 : vector<2x8x8x128xbf16>, vector<2x8x8x128xbf16>, vector<2x8x8x128xbf16> -> vector<2x8x8x384xbf16>
    %104 = vector.shape_cast %103 : vector<2x8x8x384xbf16> to vector<128x384xbf16>
    %c768 = arith.constant 768 : index
    %c0_35 = arith.constant 0 : index
    %105 = vector.load %arg7[%c768, %c0_35] : memref<1152x128xbf16, #tpu.memory_space<vmem>>, vector<384x128xbf16>
    %cst_36 = arith.constant dense<0.000000e+00> : vector<128x128xf32>
    %106 = tpu.matmul %104, %105, %cst_36 {dimension_numbers = #tpu.dot_dimension_numbers<[1], [0], [0], [1], [0, 0, 1, 1], [], []>} : vector<128x384xbf16>, vector<384x128xbf16>, vector<128x128xf32> -> vector<128x128xf32>
    %107 = arith.addf %97, %106 : vector<128x128xf32>
    %c0_37 = arith.constant 0 : index
    %c0_38 = arith.constant 0 : index
    %108 = vector.load %arg8[%c0_37, %c0_38] : memref<1x128xf32, #tpu.memory_space<vmem>>, vector<1x128xf32>
    %109 = vector.broadcast %108 : vector<1x128xf32> to vector<128x128xf32>
    %110 = arith.mulf %107, %109 : vector<128x128xf32>
    %c0_39 = arith.constant 0 : index
    %c0_40 = arith.constant 0 : index
    %111 = vector.load %arg9[%c0_39, %c0_40] : memref<1x128xf32, #tpu.memory_space<vmem>>, vector<1x128xf32>
    %112 = vector.broadcast %111 : vector<1x128xf32> to vector<128x128xf32>
    %113 = arith.addf %110, %112 : vector<128x128xf32>
    %cst_41 = arith.constant 0.000000e+00 : f32
    %114 = vector.broadcast %cst_41 : f32 to vector<128x128xf32>
    %115 = arith.maximumf %113, %114 : vector<128x128xf32>
    %116 = vector.shape_cast %115 : vector<128x128xf32> to vector<2x8x8x128xf32>
    %117 = arith.truncf %116 : vector<2x8x8x128xf32> to vector<2x8x8x128xbf16>
    %c0_42 = arith.constant 0 : index
    %c0_43 = arith.constant 0 : index
    %c0_44 = arith.constant 0 : index
    %c0_45 = arith.constant 0 : index
    %118 = vector.load %arg10[%c0_42, %c0_43, %c0_44, %c0_45] : memref<2x8x8x128xbf16, #tpu.memory_space<vmem>>, vector<2x8x8x128xbf16>
    tpu.vector_store %arg10[%c0_42, %c0_43, %c0_44, %c0_45], %117 {strides = array<i32>} : memref<2x8x8x128xbf16, #tpu.memory_space<vmem>>, vector<2x8x8x128xbf16>,
    return
  }
  func.func @transform_0(%arg0: i32, %arg1: i32) -> (i32, i32, i32, i32, i32) {
    %c0_i32 = arith.constant 0 : i32
    %c0_i32_0 = arith.constant 0 : i32
    %c0_i32_1 = arith.constant 0 : i32
    %c0_i32_2 = arith.constant 0 : i32
    return %arg0, %arg1, %c0_i32, %c0_i32_0, %c0_i32_1 : i32, i32, i32, i32, i32
  }
  func.func @transform_1(%arg0: i32, %arg1: i32) -> (i32, i32, i32, i32, i32, i32) {
    %c0_i32 = arith.constant 0 : i32
    %c0_i32_0 = arith.constant 0 : i32
    %c0_i32_1 = arith.constant 0 : i32
    %c0_i32_2 = arith.constant 0 : i32
    %c0_i32_3 = arith.constant 0 : i32
    return %arg0, %arg1, %c0_i32, %c0_i32_0, %c0_i32_1, %c0_i32_2 : i32, i32, i32, i32, i32, i32
  }
  func.func @transform_2(%arg0: i32, %arg1: i32) -> (i32, i32) {
    %c0_i32 = arith.constant 0 : i32
    %c0_i32_0 = arith.constant 0 : i32
    %c0_i32_1 = arith.constant 0 : i32
    return %c0_i32, %c0_i32_0 : i32, i32
  }
  func.func @transform_3(%arg0: i32, %arg1: i32) -> (i32, i32) {
    %c0_i32 = arith.constant 0 : i32
    %c0_i32_0 = arith.constant 0 : i32
    %c0_i32_1 = arith.constant 0 : i32
    return %c0_i32, %c0_i32_0 : i32, i32
  }
  func.func @transform_4(%arg0: i32, %arg1: i32) -> (i32, i32) {
    %c0_i32 = arith.constant 0 : i32
    %c0_i32_0 = arith.constant 0 : i32
    %c0_i32_1 = arith.constant 0 : i32
    return %c0_i32, %c0_i32_0 : i32, i32
  }
  func.func @transform_5(%arg0: i32, %arg1: i32) -> (i32, i32) {
    %c0_i32 = arith.constant 0 : i32
    %c0_i32_0 = arith.constant 0 : i32
    %c0_i32_1 = arith.constant 0 : i32
    return %c0_i32, %c0_i32_0 : i32, i32
  }
  func.func @transform_6(%arg0: i32, %arg1: i32) -> (i32, i32) {
    %c0_i32 = arith.constant 0 : i32
    %c0_i32_0 = arith.constant 0 : i32
    %c0_i32_1 = arith.constant 0 : i32
    return %c0_i32, %c0_i32_0 : i32, i32
  }
  func.func @transform_7(%arg0: i32, %arg1: i32) -> (i32, i32) {
    %c0_i32 = arith.constant 0 : i32
    %c0_i32_0 = arith.constant 0 : i32
    %c0_i32_1 = arith.constant 0 : i32
    return %c0_i32, %c0_i32_0 : i32, i32
  }
  func.func @transform_8(%arg0: i32, %arg1: i32) -> (i32, i32, i32, i32) {
    %c0_i32 = arith.constant 0 : i32
    %c0_i32_0 = arith.constant 0 : i32
    %c0_i32_1 = arith.constant 0 : i32
    return %arg0, %arg1, %c0_i32, %c0_i32_0 : i32, i32, i32, i32
  }
}

</mosaic_0001>

<bundles_post_ra>
// kernel: down_pallas.1
= control target key start
LH: loop header
LB: loop body
LE: loop exit
PB: predicated region body
PF: predicated region fallthrough
CT: control target
= control target key end

     0   :  { %s4201_s21 = smov 120   ;;  %s4202_s12 = smov 8   ;;  %vm525_vm0 = vcmask 1043456   ;;  %vm526_vm1 = vsmask.f32 3328  ;;  %vm442_vm3 = vcmask 1040384   ;;  %s6214_s0 = inlined_call_operand.vmem [shape: bf16[2,8,2,8,16], index: 0, kind: input, shape index: {}]   ;;  %s6215_s1 = inlined_call_operand.vmem [shape: bf16[2,1,4,2,8,16], index: 1, kind: input, shape index: {}]   ;;  %s6216_s2 = inlined_call_operand.vmem [shape: bf16[72,128], index: 2, kind: input, shape index: {}]   ;;  %s6217_s5 = inlined_call_operand.vmem [shape: bf16[1152,128], index: 5, kind: input, shape index: {}]   ;;  %s6218_s3 = inlined_call_operand.vmem [shape: f32[1,128], index: 3, kind: input, shape index: {}]   ;;  %s6219_s4 = inlined_call_operand.vmem [shape: f32[1,128], index: 4, kind: input, shape index: {}]   ;;  %s6220_s6 = inlined_call_operand.vmem [shape: f32[1,128], index: 6, kind: input, shape index: {}]   ;;  %s6221_s7 = inlined_call_operand.vmem [shape: f32[1,128], index: 7, kind: input, shape index: {}]   ;;  %s6222_s8 = inlined_call_operand.vmem [shape: bf16[2,8,8,128], index: 8, kind: output, shape index: {}]  }
   0x1   :  { %v32_v0 = vld [vmem:[%s6214_s0 + $0x8] sm:$0xf]  ;;  %v33_v1 = vld [vmem:[%s6214_s0 + $0xc] sm:$0xf]  ;;  %v30_v2 = vld [vmem:[%s6214_s0] sm:$0xf] }
   0x2   :  { %v4258_v3 = vmax.bf16 %v33_v1, %v32_v0  ;;  %v31_v4 = vld [vmem:[%s6214_s0 + $0x4] sm:$0xf]  ;;  %v34_v5 = vld [vmem:[%s6214_s0 + $0x10] sm:$0xf]  ;;  %v35_v6 = vld [vmem:[%s6214_s0 + $0x14] sm:$0xf] }
   0x3   :  { %v4269_v7 = vmax.bf16 %v31_v4, %v30_v2  ;;  %v160_v8 = vld [vmem:[%s6215_s1 + $0x8] sm:$0xf]  ;;  %v161_v9 = vld [vmem:[%s6215_s1 + $0xc] sm:$0xf]  ;;  %v4279_v10 = vmax.bf16 %v35_v6, %v34_v5  ;;  %v38_v12 = vld [vmem:[%s6214_s0 + $0x20] sm:$0xf] }
   0x4   :  { %96 = vrot.lane.b32.xlu1 %v4258_v3, %s4201_s21  ;;  %v4283_v11 = vmax.bf16 %v161_v9, %v160_v8  ;;  %v39_v13 = vld [vmem:[%s6214_s0 + $0x24] sm:$0xf]  ;;  %v36_v14 = vld [vmem:[%s6214_s0 + $0x18] sm:$0xf]  ;;  %v37_v15 = vld [vmem:[%s6214_s0 + $0x1c] sm:$0xf] }
   0x5   :  { %94 = vrot.lane.b32.xlu0 %v4269_v7, %s4201_s21  ;;  %v4299_v16 = vmax.bf16 %v39_v13, %v38_v12  ;;  %v4303_v17 = vmax.bf16 %v37_v15, %v36_v14  ;;  %v42_v18 = vld [vmem:[%s6214_s0 + $0x30] sm:$0xf]  ;;  %v43_v19 = vld [vmem:[%s6214_s0 + $0x34] sm:$0xf]  ;;  %v40_v20 = vld [vmem:[%s6214_s0 + $0x28] sm:$0xf] }
   0x6   :  { %v41_v21 = vld [vmem:[%s6214_s0 + $0x2c] sm:$0xf]  ;;  %v4319_v22 = vmax.bf16 %v43_v19, %v42_v18  ;;  %v162_v24 = vld [vmem:[%s6215_s1 + $0x10] sm:$0xf]  ;;  %v163_v25 = vld [vmem:[%s6215_s1 + $0x14] sm:$0xf] }
   0x7   :  { %v4323_v23 = vmax.bf16 %v41_v21, %v40_v20  ;;  %v44_v26 = vld [vmem:[%s6214_s0 + $0x38] sm:$0xf]  ;;  %v45_v27 = vld [vmem:[%s6214_s0 + $0x3c] sm:$0xf]  ;;  %v4339_v28 = vmax.bf16 %v163_v25, %v162_v24  ;;  %v168_v30 = vld [vmem:[%s6215_s1 + $0x28] sm:$0xf] }
   0x8   :  { %98 = vrot.lane.b32.xlu1 %v4279_v10, %s4201_s21  ;;  %v4343_v29 = vmax.bf16 %v45_v27, %v44_v26  ;;  %v169_v31 = vld [vmem:[%s6215_s1 + $0x2c] sm:$0xf]  ;;  %v46_v32 = vld [vmem:[%s6214_s0 + $0x40] sm:$0xf]  ;;  %v47_v33 = vld [vmem:[%s6214_s0 + $0x44] sm:$0xf] }
   0x9   :  { %192 = vrot.lane.b32.xlu0 %v4283_v11, %s4201_s21  ;;  %v4359_v34 = vmax.bf16 %v169_v31, %v168_v30  ;;  %v4363_v35 = vmax.bf16 %v47_v33, %v46_v32  ;;  %v50_v36 = vld [vmem:[%s6214_s0 + $0x50] sm:$0xf]  ;;  %v51_v37 = vld [vmem:[%s6214_s0 + $0x54] sm:$0xf]  ;;  %v48_v38 = vld [vmem:[%s6214_s0 + $0x48] sm:$0xf] }
   0xa   :  { %v49_v39 = vld [vmem:[%s6214_s0 + $0x4c] sm:$0xf]  ;;  %v4379_v40 = vmax.bf16 %v51_v37, %v50_v36  ;;  %v54_v42 = vld [vmem:[%s6214_s0 + $0x60] sm:$0xf]  ;;  %v55_v43 = vld [vmem:[%s6214_s0 + $0x64] sm:$0xf] }
   0xb   :  { %v4383_v41 = vmax.bf16 %v49_v39, %v48_v38  ;;  %v52_v44 = vld [vmem:[%s6214_s0 + $0x58] sm:$0xf]  ;;  %v53_v45 = vld [vmem:[%s6214_s0 + $0x5c] sm:$0xf]  ;;  %v4399_v46 = vmax.bf16 %v55_v43, %v54_v42  ;;  %v58_v48 = vld [vmem:[%s6214_s0 + $0x70] sm:$0xf] }
   0xc   :  { %102 = vrot.lane.b32.xlu1 %v4299_v16, %s4201_s21  ;;  %v4403_v47 = vmax.bf16 %v53_v45, %v52_v44  ;;  %v59_v49 = vld [vmem:[%s6214_s0 + $0x74] sm:$0xf]  ;;  %v56_v50 = vld [vmem:[%s6214_s0 + $0x68] sm:$0xf]  ;;  %v57_v51 = vld [vmem:[%s6214_s0 + $0x6c] sm:$0xf] }
   0xd   :  { %100 = vrot.lane.b32.xlu0 %v4303_v17, %s4201_s21  ;;  %v4419_v52 = vmax.bf16 %v59_v49, %v58_v48  ;;  %v4423_v53 = vmax.bf16 %v57_v51, %v56_v50  ;;  %v170_v54 = vld [vmem:[%s6215_s1 + $0x30] sm:$0xf]  ;;  %v171_v55 = vld [vmem:[%s6215_s1 + $0x34] sm:$0xf]  ;;  %v60_v56 = vld [vmem:[%s6214_s0 + $0x78] sm:$0xf] }
   0xe   :  { %v61_v57 = vld [vmem:[%s6214_s0 + $0x7c] sm:$0xf]  ;;  %v4439_v58 = vmax.bf16 %v171_v55, %v170_v54  ;;  %v166_v60 = vld [vmem:[%s6215_s1 + $0x20] sm:$0xf]  ;;  %v167_v61 = vld [vmem:[%s6215_s1 + $0x24] sm:$0xf] }
   0xf   :  { %v4443_v59 = vmax.bf16 %v61_v57, %v60_v56  ;;  %v158_v62 = vld [vmem:[%s6215_s1] sm:$0xf]  ;;  %v159_v63 = vld [vmem:[%s6215_s1 + $0x4] sm:$0xf]  ;;  %v4459_v0 = vmax.bf16 %v167_v61, %v166_v60  ;;  %v164_v2 = vld [vmem:[%s6215_s1 + $0x18] sm:$0xf] }
  0x10   :  { %106 = vrot.lane.b32.xlu1 %v4319_v22, %s4201_s21  ;;  %v4463_v1 = vmax.bf16 %v159_v63, %v158_v62  ;;  %v165_v4 = vld [vmem:[%s6215_s1 + $0x1c] sm:$0xf]  ;;  %vm4566_vm2 = vmand %vm525_vm0, %vm526_vm1  ;;  %s4203_s17 = smov 16   ;;  %vm443_vm4 = vsmask.f32 256  ;;  %vm648_vm6 = vcmask 64512  }
  0x11   :  { %104 = vrot.lane.b32.xlu0 %v4323_v23, %s4201_s21  ;;  %v4475_v5 = vmax.bf16 %v165_v4, %v164_v2  ;;  %vm4965_vm5 = vmand %vm442_vm3, %vm443_vm4  ;;  %vm709_vm7 = vcmask 130048   ;;  %vm867_vm8 = vcmask 195584  }
  0x14   :  { %194 = vrot.lane.b32.xlu1 %v4339_v28, %s4201_s21 }
  0x15   :  { %108 = vrot.lane.b32.xlu0 %v4343_v29, %s4201_s21 }
  0x18   :  { %200 = vrot.lane.b32.xlu1 %v4359_v34, %s4201_s21 }
  0x19   :  { %110 = vrot.lane.b32.xlu0 %v4363_v35, %s4201_s21 }
  0x1c   :  { %114 = vrot.lane.b32.xlu1 %v4379_v40, %s4201_s21 }
  0x1d   :  { %112 = vrot.lane.b32.xlu0 %v4383_v41, %s4201_s21 }
  0x20   :  { %118 = vrot.lane.b32.xlu1 %v4399_v46, %s4201_s21 }
  0x21   :  { %116 = vrot.lane.b32.xlu0 %v4403_v47, %s4201_s21 }
  0x24   :  { %122 = vrot.lane.b32.xlu1 %v4419_v52, %s4201_s21 }
  0x25   :  { %120 = vrot.lane.b32.xlu0 %v4423_v53, %s4201_s21 }
  0x28   :  { %202 = vrot.lane.b32.xlu1 %v4439_v58, %s4201_s21 }
  0x29   :  { %124 = vrot.lane.b32.xlu0 %v4443_v59, %s4201_s21 }
  0x2c   :  { %198 = vrot.lane.b32.xlu1 %v4459_v0, %s4201_s21 }
  0x2d   :  { %190 = vrot.lane.b32.xlu0 %v4463_v1, %s4201_s21 }
  0x31   :  { %196 = vrot.lane.b32.xlu0 %v4475_v5, %s4201_s21 }
  0x76   :  { %v97_v6 = vpop.permute.xlu1 %96 }
  0x77   :  { %v95_v8 = vpop.permute.xlu0 %94  ;;  %v143_v20 = vmax.bf16 %v97_v6, %v4258_v3 }
  0x78   :  { %v142_v9 = vmax.bf16 %v95_v8, %v4269_v7 }
  0x7a   :  { %v4480_v12 = vcombine.low %v142_v9, %v142_v9  ;;  %v99_v13 = vpop.permute.xlu1 %98 }
  0x7b   :  { %v144_v14 = vmax.bf16 %v99_v13, %v4279_v10  ;;  %v193_v15 = vpop.permute.xlu0 %192 }
  0x7c   :  { %v215_v18 = vmax.bf16 %v193_v15, %v4283_v11  ;;  %552 = vrot.lane.b32.xlu1 %v4480_v12, %s4202_s12  ;;  %v4498_v11 = vcombine.low %v143_v20, %v143_v20  ;;  %v300_v43 = vshll.u32 %v4480_v12, 16  ;;  %v297_v55 = vshrl.u32 %v4480_v12, 16 }
  0x7d   :  { %v4486_v19 = vcombine.low %v144_v14, %v144_v14 }
  0x7e   :  { %v4489_v21 = vcombine.low %v215_v18, %v215_v18  ;;  %v103_v24 = vpop.permute.xlu1 %102  ;;  %v6227_v37 = vshll.u32 %v4498_v11, 16 }
  0x7f   :  { %v146_v7 = vmax.bf16 %v103_v24, %v4299_v16  ;;  %v101_v25 = vpop.permute.xlu0 %100  ;;  %v314_v54 = vshll.u32 %v4486_v19, 16  ;;  %v311_v56 = vshrl.u32 %v4486_v19, 16 }
  0x80   :  { %556 = vrot.lane.b32.xlu1 %v4486_v19, %s4202_s12  ;;  %550 = vrot.lane.b32.xlu0 %v4489_v21, %s4202_s12  ;;  %v145_v26 = vmax.bf16 %v101_v25, %v4303_v17  ;;  %v290_v63 = vshrl.u32 %v4489_v21, 16  ;;  %v293_v2 = vshll.u32 %v4489_v21, 16  ;;  %v6266_v21 = vshll.u32 %v4498_v11, 16 }
  0x81   :  { %v4496_v10 = vcombine.low %v146_v7, %v146_v7  ;;  %v473_v14 = vrot.slane %v314_v54, 1  ;;  %v4574_v15 = vrot.slane %v311_v56, 7 }
  0x82   :  { %v107_v27 = vpop.permute.xlu1 %106  ;;  %v4508_v31 = vcombine.low %v145_v26, %v145_v26 }
  0x83   :  { %v148_v3 = vmax.bf16 %v107_v27, %v4319_v22  ;;  %v105_v30 = vpop.permute.xlu0 %104  ;;  %v328_v4 = vshll.u32 %v4496_v10, 16  ;;  %v325_v24 = vshrl.u32 %v4496_v10, 16 }
  0x84   :  { %560 = vrot.lane.b32.xlu1 %v4496_v10, %s4202_s12  ;;  %554 = vrot.lane.b32.xlu0 %v4498_v11, %s4202_s12  ;;  %v147_v32 = vmax.bf16 %v105_v30, %v4323_v23  ;;  %v6225_v18 = vshll.u32 %v4508_v31, 16 }
  0x85   :  { %v4506_v16 = vcombine.low %v148_v3, %v148_v3  ;;  %v4584_v3 = vrot.slane %v290_v63, 7 }
  0x86   :  { %v195_v33 = vpop.permute.xlu1 %194  ;;  %v4519_v38 = vcombine.low %v147_v32, %v147_v32  ;;  %v467_v32 = vrot.slane %v293_v2, 1 }
  0x87   :  { %v216_v36 = vmax.bf16 %v195_v33, %v4339_v28  ;;  %v109_v17 = vpop.permute.xlu0 %108  ;;  %v6226_v7 = vshll.u32 %v4506_v16, 16 }
  0x88   :  { %564 = vrot.lane.b32.xlu1 %v4506_v16, %s4202_s12  ;;  %558 = vrot.lane.b32.xlu0 %v4508_v31, %s4202_s12  ;;  %v149_v39 = vmax.bf16 %v109_v17, %v4343_v29  ;;  %v471_v29 = vrot.slane %v6227_v37, 1 }
  0x89   :  { %v4516_v22 = vcombine.low %v216_v36, %v216_v36  ;;  %v477_v36 = vrot.slane %v328_v4, 1 }
  0x8a   :  { %v201_v42 = vpop.permute.xlu1 %200  ;;  %v4528_v44 = vcombine.low %v149_v39, %v149_v39 }
  0x8b   :  { %v111_v23 = vpop.permute.xlu0 %110  ;;  %v219_v45 = vmax.bf16 %v201_v42, %v4359_v34  ;;  %v469_v34 = vrot.slane %v300_v43, 1  ;;  %v4602_v42 = vor.u32 %v473_v14, %v311_v56  ;;  %v4621_v56 = vor.u32 %v467_v32, %v290_v63 }
  0x8c   :  { %v150_v28 = vmax.bf16 %v111_v23, %v4363_v35  ;;  %785 = vrot.lane.b32.xlu1 %v4516_v22, %s4202_s12  ;;  %562 = vrot.lane.b32.xlu0 %v4519_v38, %s4202_s12  ;;  %v304_v35 = vshrl.u32 %v4498_v11, 16  ;;  %v318_v23 = vshrl.u32 %v4508_v31, 16  ;;  %v6228_v32 = vshrl.u32 %v4528_v44, 16 }
  0x8d   :  { %v4548_v57 = vcombine.low %v219_v45, %v219_v45  ;;  %v4123_v45 = vld [vmem:[%s6216_s2 + $0xc] sm:$0xff]   ;;  %v532_v14 = vsel %vm4566_vm2, %v4602_v42, 0  ;;  %v529_v42 = vsel %vm4566_vm2, %v4621_v56, 0 }
  0x8e   :  { %v4531_v48 = vcombine.low %v150_v28, %v150_v28  ;;  %v115_v49 = vpop.permute.xlu1 %114  ;;  %v4551_v62 = vor.u32 %v471_v29, %v304_v35  ;;  %v4557_v9 = vrot.slane %v304_v35, 7  ;;  %v6223_v28 = vshll.u32 %v4519_v38, 16  ;;  %3813 = vmatprep.subr.bf16.mxu0 %v4123_v45 }
  0x8f   :  { %v152_v50 = vmax.bf16 %v115_v49, %v4379_v40  ;;  %v113_v51 = vpop.permute.xlu0 %112  ;;  %v4611_v49 = vrot.slane %v325_v24, 7  ;;  %v339_v35 = vshrl.u32 %v4506_v16, 16  ;;  %3814 = vmatpush3.bf16.msra.mxu0 %v4123_v45  ;;  %v6229_v45 = vshrl.u32 %v4548_v57, 16 }
  0x90   :  { %566 = vrot.lane.b32.xlu0 %v4528_v44, %s4202_s12  ;;  %572 = vrot.lane.b32.xlu1 %v4531_v48, %s4202_s12  ;;  %v151_v60 = vmax.bf16 %v113_v51, %v4383_v41  ;;  %v4563_v41 = vor.u32 %v469_v34, %v297_v55  ;;  %v481_v51 = vrot.slane %v6226_v7, 1  ;;  %v6224_v34 = vshll.u32 %v4516_v22, 16 }
  0x91   :  { %v4546_v40 = vcombine.low %v152_v50, %v152_v50  ;;  %v370_v56 = vshll.u32 %v4531_v48, 16 }
  0x92   :  { %v119_v61 = vpop.permute.xlu1 %118  ;;  %v4581_v25 = vcombine.low %v151_v60, %v151_v60  ;;  %v530_v39 = vsel %vm4566_vm2, %v4563_v41, 0  ;;  %v4623_v60 = vor.u32 %v477_v36, %v325_v24  ;;  %v4641_v24 = vrot.slane %v318_v23, 7 }
  0x93   :  { %v154_v6 = vmax.bf16 %v119_v61, %v4399_v46  ;;  %v117_v8 = vpop.permute.xlu0 %116  ;;  %v4572_v46 = vrot.slane %v297_v55, 7  ;;  %v4628_v61 = vld [vmem:[%s6216_s2 + $0x14] ss:$0 sps:$4 sm:$0xff]   ;;  %v4722_v41 = vor.u32 %v314_v54, %v4574_v15  ;;  %v4744_v54 = vor.u32 %v6266_v21, %v4557_v9 }
  0x94   :  { %570 = vrot.lane.b32.xlu0 %v4548_v57, %s4202_s12  ;;  %576 = vrot.lane.b32.xlu1 %v4546_v40, %s4202_s12  ;;  %v153_v26 = vmax.bf16 %v117_v8, %v4403_v47 }
  0x95   :  { %v4577_v20 = vcombine.low %v154_v6, %v154_v6  ;;  %4117 = vmatprep.subr.msk.bf16.mxu0 %vm525_vm0, %v4628_v61 }
  0x96   :  { %v123_v27 = vpop.permute.xlu1 %122 }
  0x97   :  { %v121_v30 = vpop.permute.xlu0 %120  ;;  %v156_v47 = vmax.bf16 %v123_v27, %v4419_v52  ;;  %v4613_v52 = vcombine.low %v153_v26, %v153_v26  ;;  %v332_v26 = vshrl.u32 %v4519_v38, 16  ;;  %v6235_v12 = vshrl.u32 %v4577_v20, 16 }
  0x98   :  { %v155_v17 = vmax.bf16 %v121_v30, %v4423_v53  ;;  %580 = vrot.lane.b32.xlu1 %v4577_v20, %s4202_s12  ;;  %574 = vrot.lane.b32.xlu0 %v4581_v25, %s4202_s12  ;;  %v475_v53 = vrot.slane %v6225_v18, 1  ;;  %v760_v30 = vshrl.u32 %v4516_v22, 16 }
  0x99   :  { %v4630_v6 = vcombine.low %v156_v47, %v156_v47  ;;  %v6231_v47 = vshll.u32 %v4528_v44, 16  ;;  %v397_v10 = vrot.slane %v6235_v12, 7 }
  0x9a   :  { %v4615_v29 = vcombine.low %v155_v17, %v155_v17  ;;  %v203_v50 = vpop.permute.xlu1 %202  ;;  %v4644_v27 = vor.u32 %v475_v53, %v318_v23  ;;  %v341_v17 = vrot.slane %v339_v35, 7  ;;  %v777_v23 = vrot.slane %v6224_v34, 1 }
  0x9b   :  { %v125_v55 = vpop.permute.xlu0 %124  ;;  %v220_v63 = vmax.bf16 %v203_v50, %v4439_v58  ;;  %v4652_v58 = vor.u32 %v481_v51, %v339_v35  ;;  %v6230_v50 = vshrl.u32 %v4531_v48, 16  ;;  %v534_v35 = vsel %vm4566_vm2, %v4623_v60, 0 }
  0x9c   :  { %v157_v8 = vmax.bf16 %v125_v55, %v4443_v59  ;;  %578 = vrot.lane.b32.xlu0 %v4613_v52, %s4202_s12  ;;  %582 = vrot.lane.b32.xlu1 %v4615_v29, %s4202_s12  ;;  %v479_v59 = vrot.slane %v6223_v28, 1  ;;  %v334_v55 = vrot.slane %v332_v26, 7  ;;  %v348_v28 = vrot.slane %v6228_v32, 7 }
  0x9d   :  { %v4664_v51 = vcombine.low %v220_v63, %v220_v63  ;;  %v762_v63 = vrot.slane %v760_v30, 7  ;;  %v4686_v7 = vor.u32 %v777_v23, %v760_v30  ;;  %v4690_v37 = vrot.slane %v6231_v47, 1 }
  0x9e   :  { %v4650_v36 = vcombine.low %v157_v8, %v157_v8  ;;  %v4677_v33 = vor.u32 %v479_v59, %v332_v26  ;;  %v199_v26 = vpop.permute.xlu1 %198  ;;  %v4695_v59 = vor.u32 %v300_v43, %v4572_v46  ;;  %v362_v32 = vrot.slane %v6229_v45, 7 }
  0x9f   :  { %v191_v53 = vpop.permute.xlu0 %190  ;;  %v374_v30 = vshrl.u32 %v4581_v25, 16  ;;  %v6233_v43 = vshrl.u32 %v4613_v52, 16  ;;  %v6232_v46 = vshrl.u32 %v4630_v6, 16  ;;  %v489_v23 = vrot.slane %v370_v56, 1 }
  0xa0   :  { %584 = vrot.lane.b32.xlu0 %v4630_v6, %s4202_s12  ;;  %586 = vrot.lane.b32.xlu1 %v4650_v36, %s4202_s12  ;;  %v214_v18 = vmax.bf16 %v191_v53, %v4463_v1  ;;  %v369_v1 = vrot.slane %v6230_v50, 7  ;;  %v381_v53 = vshrl.u32 %v4546_v40, 16  ;;  %v384_v45 = vshll.u32 %v4546_v40, 16 }
  0xa1   :  { %v6234_v50 = vshrl.u32 %v4615_v29, 16  ;;  %v218_v8 = vmax.bf16 %v199_v26, %v4459_v0  ;;  %v377_v60 = vshll.u32 %v4581_v25, 16  ;;  %v4732_v47 = vor.u32 %v328_v4, %v4611_v49 }
  0xa2   :  { %v4715_v34 = vcombine.low %v214_v18, %v214_v18  ;;  %v383_v0 = vrot.slane %v381_v53, 7  ;;  %v376_v18 = vrot.slane %v374_v30, 7  ;;  %v416_v19 = vshrl.u32 %v4650_v36, 16 }
  0xa3   :  { %v390_v4 = vrot.slane %v6233_v43, 7  ;;  %v411_v15 = vrot.slane %v6232_v46, 7  ;;  %v6238_v49 = vshrl.u32 %v4664_v51, 16  ;;  %v4757_v9 = vcombine.low %v218_v8, %v218_v8 }
  0xa4   :  { %787 = vrot.lane.b32.xlu0 %v4664_v51, %s4202_s12  ;;  %612 = vrot.lane.b32.xlu1 %v530_v39, %s4203_s17  ;;  %v4727_v39 = vor.u32 %v293_v2, %v4584_v3  ;;  %v398_v2 = vshll.u32 %v4577_v20, 16  ;;  %v404_v3 = vrot.slane %v6234_v50, 7  ;;  %v6236_v11 = vshrl.u32 %v4715_v34, 16 }
  0xa5   :  { %v6268_v26 = vshll.u32 %v4508_v31, 16  ;;  %v6269_v46 = vshll.u32 %v4516_v22, 16  ;;  %v6270_v50 = vshll.u32 %v4519_v38, 16  ;;  %v418_v8 = vrot.slane %v416_v19, 7 }
  0xa6   :  { %v6237_v31 = vshrl.u32 %v4757_v9, 16  ;;  %v4785_v22 = vor.u32 %v370_v56, %v369_v1  ;;  %v4801_v1 = vor.u32 %v384_v45, %v383_v0 }
  0xa7   :  { %v4766_v21 = vor.u32 %v6268_v26, %v4641_v24  ;;  %v4770_v43 = vor.u32 %v6269_v46, %v762_v63  ;;  %v4774_v12 = vor.u32 %v6270_v50, %v334_v55  ;;  %v6272_v24 = vshll.u32 %v4528_v44, 16 }
  0xa8   :  { %610 = vrot.lane.b32.xlu0 %v529_v42, %s4203_s17  ;;  %616 = vrot.lane.b32.xlu1 %v532_v14, %s4203_s17  ;;  %v6267_v14 = vshll.u32 %v4506_v16, 16  ;;  %v6271_v16 = vsel %vm4566_vm2, %v4551_v62, 0  ;;  %v405_v50 = vshll.u32 %v4615_v29, 16  ;;  %v412_v55 = vshll.u32 %v4630_v6, 16 }
  0xa9   :  { %v4789_v38 = vor.u32 %v6272_v24, %v348_v28  ;;  %v419_v63 = vshll.u32 %v4650_v36, 16  ;;  %v769_v62 = vrot.slane %v6238_v49, 7  ;;  %v355_v56 = vrot.slane %v6237_v31, 7 }
  0xaa   :  { %v4761_v42 = vor.u32 %v6267_v14, %v341_v17  ;;  %v391_v17 = vshll.u32 %v4613_v52, 16  ;;  %v6273_v28 = vshll.u32 %v4548_v57, 16  ;;  %v4807_v14 = vor.u32 %v398_v2, %v397_v10 }
  0xab   :  { %v4809_v26 = vor.u32 %v377_v60, %v376_v18  ;;  %v770_v24 = vshll.u32 %v4664_v51, 16  ;;  %v4826_v18 = vor.u32 %v419_v63, %v418_v8  ;;  %v4828_v10 = vor.u32 %v412_v55, %v411_v15 }
  0xac   :  { %614 = vrot.lane.b32.xlu0 %v6271_v16, %s4203_s17  ;;  %620 = vrot.lane.b32.xlu1 %v534_v35, %s4203_s17  ;;  %v285_v35 = vrot.slane %v6236_v11, 7  ;;  %v4805_v46 = vor.u32 %v6273_v28, %v362_v32  ;;  %v4811_v16 = vor.u32 %v405_v50, %v404_v3  ;;  %v6274_v11 = vsel %vm4566_vm2, %v4644_v27, 0 }
  0xad   :  { %v6275_v32 = vsel %vm4566_vm2, %v4652_v58, 0  ;;  %v4824_v0 = vor.u32 %v391_v17, %v390_v4  ;;  %v535_v3 = vsel %vm4566_vm2, %v4677_v33, 0  ;;  %v6276_v28 = vshrl.u32 %v4528_v44, 16 }
  0xae   :  { %v356_v31 = vshll.u32 %v4757_v9, 16  ;;  %v783_v58 = vsel %vm4566_vm2, %v4686_v7, 0  ;;  %v6277_v4 = vshrl.u32 %v4531_v48, 16  ;;  %v6278_v8 = vshll.u32 %v4548_v57, 16 }
  0xaf   :  { %v484_v27 = vor.u32 %v4690_v37, %v6276_v28  ;;  %v4845_v49 = vor.u32 %v770_v24, %v769_v62  ;;  %v493_v33 = vrot.slane %v384_v45, 1  ;;  %v900_v37 = vsel %vm525_vm0, %v4628_v61, 0 }
  0xb0   :  { %618 = vrot.lane.b32.xlu0 %v6274_v11, %s4203_s17  ;;  %624 = vrot.lane.b32.xlu1 %v6275_v32, %s4203_s17  ;;  %v286_v11 = vshll.u32 %v4715_v34, 16  ;;  %v490_v15 = vor.u32 %v489_v23, %v6277_v4  ;;  %v487_v32 = vrot.slane %v6278_v8, 1  ;;  %v4851_v28 = vor.u32 %v356_v31, %v355_v56  ;;  %v197_v56 = vpop.permute.xlu0 %196 }
  0xb1   :  { %3816 = vmatpush3.bf16.msra.mxu0 %v900_v37  ;;  %v491_v48 = vrot.slane %v377_v60, 1  ;;  %v497_v7 = vrot.slane %v398_v2, 1  ;;  %v537_v23 = vsel %vm4566_vm2, %v484_v27, 0  ;;  %v6279_v62 = vshrl.u32 %v4548_v57, 16 }
  0xb2   :  { %v4849_v44 = vor.u32 %v286_v11, %v285_v35  ;;  %v540_v45 = vsel %vm4566_vm2, %v490_v15, 0  ;;  %v494_v35 = vor.u32 %v493_v33, %v381_v53  ;;  %v6280_v2 = vshrl.u32 %v4577_v20, 16 }
  0xb3   :  { %v488_v61 = vor.u32 %v487_v32, %v6279_v62  ;;  %v492_v60 = vor.u32 %v491_v48, %v374_v30  ;;  %v495_v27 = vrot.slane %v391_v17, 1  ;;  %v501_v40 = vrot.slane %v412_v55, 1 }
  0xb4   :  { %622 = vrot.lane.b32.xlu0 %v535_v3, %s4203_s17  ;;  %791 = vrot.lane.b32.xlu1 %v783_v58, %s4203_s17  ;;  %v498_v3 = vor.u32 %v497_v7, %v6280_v2  ;;  %v542_v57 = vsel %vm4566_vm2, %v494_v35, 0  ;;  %v217_v53 = vmax.bf16 %v197_v56, %v4475_v5  ;;  %v6281_v30 = vshrl.u32 %v4613_v52, 16  ;;  %v4889_v5 = vld [vmem:[%s6216_s2] sm:$0xff]  }
  0xb5   :  { %v539_v58 = vsel %vm4566_vm2, %v488_v61, 0  ;;  %v541_v25 = vsel %vm4566_vm2, %v492_v60, 0  ;;  %v6282_v4 = vshrl.u32 %v4630_v6, 16  ;;  %v499_v8 = vrot.slane %v405_v50, 1  ;;  %3837 = vmatprep.subr.bf16.mxu0 %v4889_v5 }
  0xb6   :  { %v544_v20 = vsel %vm4566_vm2, %v498_v3, 0  ;;  %v496_v17 = vor.u32 %v495_v27, %v6281_v30  ;;  %v503_v55 = vrot.slane %v419_v63, 1  ;;  %v3326_v32 = vcombine.low %v217_v53, %v217_v53 }
  0xb7   :  { %v502_v15 = vor.u32 %v501_v40, %v6282_v4  ;;  %v779_v33 = vrot.slane %v770_v24, 1  ;;  %v6283_v50 = vshrl.u32 %v4615_v29, 16  ;;  %v6284_v24 = vshrl.u32 %v4664_v51, 16  ;;  %v172_v51 = vld [vmem:[%s6215_s1 + $0x38] sm:$0xf] }
  0xb8   :  { %626 = vrot.lane.b32.xlu0 %v537_v23, %s4203_s17  ;;  %632 = vrot.lane.b32.xlu1 %v540_v45, %s4203_s17  ;;  %v1191_v37 = vshrl.u32 %v3326_v32, 16  ;;  %v543_v52 = vsel %vm4566_vm2, %v496_v17, 0  ;;  %v504_v48 = vor.u32 %v503_v55, %v416_v19  ;;  %v1194_v45 = vshll.u32 %v3326_v32, 16  ;;  %v173_v19 = vld [vmem:[%s6215_s1 + $0x3c] sm:$0xf] }
  0xb9   :  { %v546_v6 = vsel %vm4566_vm2, %v502_v15, 0  ;;  %v500_v63 = vor.u32 %v499_v8, %v6283_v50  ;;  %v780_v23 = vor.u32 %v779_v33, %v6284_v24  ;;  %v465_v62 = vrot.slane %v286_v11, 1  ;;  %v4170_v24 = vld [vmem:[%s6217_s5 + $0x88] sm:$0xff]  }
  0xba   :  { %v1193_v7 = vrot.slane %v1191_v37, 7  ;;  %v547_v29 = vsel %vm4566_vm2, %v504_v48, 0  ;;  %v6285_v11 = vshrl.u32 %v4715_v34, 16  ;;  %v485_v60 = vrot.slane %v356_v31, 1 }
  0xbb   :  { %v545_v61 = vsel %vm4566_vm2, %v500_v63, 0  ;;  %v784_v36 = vsel %vm4566_vm2, %v780_v23, 0  ;;  %v4925_v2 = vmax.bf16 %v173_v19, %v172_v51  ;;  %v6286_v27 = vshrl.u32 %v4757_v9, 16 }
  0xbc   :  { %630 = vrot.lane.b32.xlu0 %v539_v58, %s4203_s17  ;;  %636 = vrot.lane.b32.xlu1 %v542_v57, %s4203_s17  ;;  %v4908_v35 = vor.u32 %v1194_v45, %v1193_v7  ;;  %v466_v56 = vor.u32 %v465_v62, %v6285_v11  ;;  %v1208_v57 = vrot.slane %v1194_v45, 1  ;;  %v447_v62 = vsel %vm4965_vm5, 0, %v4695_v59 }
  0xbd   :  { %v486_v58 = vor.u32 %v485_v60, %v6286_v27  ;;  %v449_v59 = vsel %vm4965_vm5, 0, %v4722_v41  ;;  %v4126_v41 = vld [vmem:[%s6216_s2 + $0x8] ss:$0 sps:$4 sm:$0xff]  }
  0xbe   :  { %v528_v3 = vsel %vm4566_vm2, %v466_v56, 0  ;;  %v1209_v40 = vor.u32 %v1208_v57, %v1191_v37 }
  0xbf   :  { %v538_v31 = vsel %vm4566_vm2, %v486_v58, 0 }
  0xc0   :  { %634 = vrot.lane.b32.xlu0 %v541_v25, %s4203_s17  ;;  %640 = vrot.lane.b32.xlu1 %v544_v20, %s4203_s17 }
  0xc4   :  { %638 = vrot.lane.b32.xlu0 %v543_v52, %s4203_s17  ;;  %644 = vrot.lane.b32.xlu1 %v546_v6, %s4203_s17 }
  0xc8   :  { %642 = vrot.lane.b32.xlu0 %v545_v61, %s4203_s17  ;;  %646 = vrot.lane.b32.xlu1 %v547_v29, %s4203_s17  ;;  %v446_v61 = vsel %vm4965_vm5, 0, %v4727_v39  ;;  %v448_v39 = vsel %vm4965_vm5, 0, %v4744_v54  ;;  %v451_v54 = vsel %vm4965_vm5, 0, %v4732_v47 }
  0xcc   :  { %793 = vrot.lane.b32.xlu0 %v784_v36, %s4203_s17  ;;  %548 = vrot.lane.b32.xlu1 %v4715_v34, %s4202_s12  ;;  %v1214_v34 = vsel %vm4566_vm2, %v1209_v40, 0 }
  0xd0   :  { %204 = vrot.lane.b32.xlu1 %v4925_v2, %s4201_s21  ;;  %608 = vrot.lane.b32.xlu0 %v528_v3, %s4203_s17 }
  0xd4   :  { %568 = vrot.lane.b32.xlu0 %v4757_v9, %s4202_s12  ;;  %628 = vrot.lane.b32.xlu1 %v538_v31, %s4203_s17 }
  0xd8   :  { %1216 = vrot.lane.b32.xlu0 %v3326_v32, %s4202_s12  ;;  %1222 = vrot.lane.b32.xlu1 %v1214_v34, %s4203_s17 }
  0xee   :  { %v553_v53 = vpop.permute.xlu1 %552 }
  0xef   :  { %v657_v29 = vsel %vm648_vm6, %v447_v62, %v553_v53 }
  0xf2   :  { %v557_v25 = vpop.permute.xlu1 %556  ;;  %v551_v20 = vpop.permute.xlu0 %550 }
  0xf3   :  { %v654_v36 = vsel %vm648_vm6, %v446_v61, %v551_v20  ;;  %v663_v3 = vsel %vm648_vm6, %v449_v59, %v557_v25  ;;  %v450_v25 = vsel %vm4965_vm5, 0, %v4766_v21  ;;  %v1069_v21 = vsel %vm525_vm0, %v4126_v41, 0 }
  0xf6   :  { %v561_v30 = vpop.permute.xlu1 %560  ;;  %v555_v17 = vpop.permute.xlu0 %554 }
  0xf7   :  { %v660_v27 = vsel %vm648_vm6, %v448_v39, %v555_v17  ;;  %v669_v20 = vsel %vm648_vm6, %v451_v54, %v561_v30  ;;  %v5019_v30 = vld [vmem:[%s6216_s2 + $0x18] sm:$0xff]  }
  0xfa   :  { %v565_v4 = vpop.permute.xlu1 %564  ;;  %v559_v15 = vpop.permute.xlu0 %558 }
  0xfb   :  { %v666_v17 = vsel %vm648_vm6, %v450_v25, %v559_v15  ;;  %v453_v15 = vsel %vm4965_vm5, 0, %v4761_v42  ;;  %v454_v42 = vsel %vm4965_vm5, 0, %v4789_v38  ;;  %v457_v38 = vsel %vm4965_vm5, 0, %v4785_v22 }
  0xfe   :  { %v4943_v8 = vpop.permute.xlu1 %785  ;;  %v563_v55 = vpop.permute.xlu0 %562 }
 0x102   :  { %v4945_v9 = vpop.permute.xlu1 %572  ;;  %v4947_v33 = vpop.permute.xlu0 %566 }
 0x106   :  { %v4949_v37 = vpop.permute.xlu1 %576  ;;  %v4951_v52 = vpop.permute.xlu0 %570 }
 0x10a   :  { %v4953_v32 = vpop.permute.xlu1 %580  ;;  %v4955_v6 = vpop.permute.xlu0 %574 }
 0x10e   :  { %v4957_v50 = vpop.permute.xlu1 %582  ;;  %v4959_v63 = vpop.permute.xlu0 %578 }
 0x112   :  { %v4961_v48 = vpop.permute.xlu1 %586  ;;  %v4963_v7 = vpop.permute.xlu0 %584 }
 0x116   :  { %v613_v23 = vpop.permute.xlu1 %612  ;;  %v4969_v45 = vpop.permute.xlu0 %787 }
 0x117   :  { %v715_v11 = vsel %vm709_vm7, %v657_v29, %v613_v23 }
 0x11a   :  { %v617_v51 = vpop.permute.xlu1 %616  ;;  %v611_v19 = vpop.permute.xlu0 %610 }
 0x11b   :  { %v4981_v56 = vsel %vm709_vm7, %v654_v36, %v611_v19  ;;  %v719_v31 = vsel %vm709_vm7, %v663_v3, %v617_v51  ;;  %v675_v51 = vsel %vm648_vm6, %v453_v15, %v565_v4 }
 0x11c   :  { %v3282_v60 = vcombine.low %v4981_v56, %v715_v11 }
 0x11e   :  { %v621_v58 = vpop.permute.xlu1 %620  ;;  %3817 = vmatprep.mubr.msk.bf16.mxu0 %vm867_vm8, %v3282_v60  ;;  %v615_v57 = vpop.permute.xlu0 %614 }
 0x11f   :  { %v717_v40 = vsel %vm709_vm7, %v660_v27, %v615_v57  ;;  %v723_v61 = vsel %vm709_vm7, %v669_v20, %v621_v58 }
 0x120   :  { %v3283_v34 = vcombine.low %v717_v40, %v719_v31  ;;  %v4995_v53 = vcombine.low %v715_v11, %v717_v40 }
 0x122   :  { %v625_v23 = vpop.permute.xlu1 %624  ;;  %3818 = vmatmul.mubr.msk.bf16.vlgmr.msra.gmra.mrb[0].mxu0 %vm867_vm8, %v3283_v34  ;;  %v619_v62 = vpop.permute.xlu0 %618 }
 0x123   :  { %v721_v29 = vsel %vm709_vm7, %v666_v17, %v619_v62  ;;  %3838 = vmatpush3.bf16.msra.mxu0 %v4889_v5  ;;  %v452_v5 = vsel %vm4965_vm5, 0, %v4774_v12  ;;  %v727_v59 = vsel %vm709_vm7, %v675_v51, %v625_v23  ;;  %v775_v12 = vsel %vm4965_vm5, 0, %v4770_v43 }
 0x124   :  { %v3284_v36 = vcombine.low %v721_v29, %v723_v61  ;;  %v5012_v47 = vcombine.low %v719_v31, %v721_v29  ;;  %4118 = vmatprep.subr.msk.bf16.mxu0 %vm525_vm0, %v4126_v41  ;;  %v672_v19 = vsel %vm648_vm6, %v452_v5, %v563_v55  ;;  %v797_v4 = vsel %vm648_vm6, %v775_v12, %v4943_v8 }
 0x125   :  { %v678_v55 = vsel %vm648_vm6, %v454_v42, %v4947_v33  ;;  %v456_v8 = vsel %vm4965_vm5, 0, %v4805_v46  ;;  %v687_v33 = vsel %vm648_vm6, %v457_v38, %v4945_v9  ;;  %v459_v46 = vsel %vm4965_vm5, 0, %v4801_v1 }
 0x126   :  { %v792_v11 = vpop.permute.xlu1 %791  ;;  %3821 = vmatprep.mubr.msk.bf16.mxu0 %vm867_vm8, %v3284_v36  ;;  %v623_v60 = vpop.permute.xlu0 %622  ;;  %v684_v41 = vsel %vm648_vm6, %v456_v8, %v4951_v52  ;;  %v458_v9 = vsel %vm4965_vm5, 0, %v4809_v26  ;;  %v693_v52 = vsel %vm648_vm6, %v459_v46, %v4949_v37  ;;  %v461_v26 = vsel %vm4965_vm5, 0, %v4807_v14 }
 0x127   :  { %v725_v39 = vsel %vm709_vm7, %v672_v19, %v623_v60  ;;  %3840 = vmatpush3.bf16.msra.mxu0 %v1069_v21  ;;  %v5047_v31 = vsel %vm709_vm7, %v797_v4, %v792_v11  ;;  %v690_v23 = vsel %vm648_vm6, %v458_v9, %v4955_v6  ;;  %v460_v37 = vsel %vm4965_vm5, 0, %v4824_v0 }
 0x128   :  { %v3285_v3 = vcombine.low %v725_v39, %v727_v59  ;;  %v5032_v27 = vcombine.low %v723_v61, %v725_v39  ;;  %3861 = vmatprep.subr.bf16.mxu0 %v5019_v30  ;;  %v699_v6 = vsel %vm648_vm6, %v461_v26, %v4953_v32  ;;  %v696_v15 = vsel %vm648_vm6, %v460_v37, %v4959_v63  ;;  %v4132_v26 = vld [vmem:[%s6217_s5 + $0xc8] sm:$0xff]  }
 0x129   :  { %v462_v0 = vsel %vm4965_vm5, 0, %v4811_v16  ;;  %v464_v32 = vsel %vm4965_vm5, 0, %v4826_v18  ;;  %v463_v63 = vsel %vm4965_vm5, 0, %v4828_v10  ;;  %v445_v38 = vsel %vm4965_vm5, 0, %v4849_v44  ;;  %v4129_v44 = vld [vmem:[%s6217_s5 + $0x100] sm:$0xff]  }
 0x12a   :  { %v633_v58 = vpop.permute.xlu1 %632  ;;  %3822 = vmatmul.mubr.msk.bf16.gmra.mrb[4].mxu0 %vm867_vm8, %v3285_v3  ;;  %v627_v57 = vpop.permute.xlu0 %626  ;;  %v708_v39 = vsel %vm648_vm6, %v464_v32, %v4961_v48  ;;  %v705_v3 = vsel %vm648_vm6, %v463_v63, %v4963_v7  ;;  %v776_v48 = vsel %vm4965_vm5, 0, %v4845_v49  ;;  %3981 = vmatprep.subr.bf16.mxu1 %v4129_v44  ;;  %v4137_v32 = vld [vmem:[%s6217_s5 + $0x120] sm:$0xff]  }
 0x12b   :  { %v729_v40 = vsel %vm709_vm7, %v678_v55, %v627_v57  ;;  %v735_v20 = vsel %vm709_vm7, %v687_v33, %v633_v58  ;;  %v800_v7 = vsel %vm648_vm6, %v776_v48, %v4969_v45  ;;  %v4138_v63 = vld [vmem:[%s6217_s5 + $0xe0] sm:$0xff]  }
 0x12c   :  { %v3286_v43 = vcombine.low %v729_v40, %v5047_v31  ;;  %v5051_v34 = vcombine.low %v727_v59, %v729_v40  ;;  %v702_v59 = vsel %vm648_vm6, %v462_v0, %v4957_v50  ;;  %v4136_v0 = vld [vmem:[%s6217_s5 + $0xd8] sm:$0xff]  }
 0x12e   :  { %v637_v54 = vpop.permute.xlu1 %636  ;;  %3825 = vmatprep.mubr.msk.bf16.mxu0 %vm867_vm8, %v3286_v43  ;;  %v631_v25 = vpop.permute.xlu0 %630 }
 0x12f   :  { %v5066_v17 = vsel %vm709_vm7, %v684_v41, %v631_v25  ;;  %v739_v29 = vsel %vm709_vm7, %v693_v52, %v637_v54 }
 0x130   :  { %v3287_v22 = vcombine.low %v5066_v17, %v735_v20 }
 0x132   :  { %v641_v62 = vpop.permute.xlu1 %640  ;;  %3826 = vmatmul.mubr.msk.bf16.gmra.mrb[8].mxu0 %vm867_vm8, %v3287_v22  ;;  %v635_v61 = vpop.permute.xlu0 %634  ;;  %v455_v22 = vsel %vm4965_vm5, 0, %v4851_v28 }
 0x133   :  { %v737_v36 = vsel %vm709_vm7, %v690_v23, %v635_v61  ;;  %v743_v19 = vsel %vm709_vm7, %v699_v6, %v641_v62  ;;  %v4131_v61 = vld [vmem:[%s6217_s5 + $0x108] sm:$0xff]  }
 0x134   :  { %v3288_v21 = vcombine.low %v737_v36, %v739_v29  ;;  %v5082_v1 = vcombine.low %v735_v20, %v737_v36  ;;  %v4128_v20 = vld [vmem:[%s6216_s2 + $0x20] ss:$0 sps:$4 sm:$0xff]   ;;  %v1206_v36 = vsel %vm4965_vm5, 0, %v4908_v35 }
 0x135   :  { %v1261_v35 = vsel %vm525_vm0, %v4128_v20, 0 }
 0x136   :  { %v645_v5 = vpop.permute.xlu1 %644  ;;  %3829 = vmatprep.mubr.msk.bf16.mxu0 %vm867_vm8, %v3288_v21  ;;  %v639_v51 = vpop.permute.xlu0 %638 }
 0x137   :  { %v741_v11 = vsel %vm709_vm7, %v696_v15, %v639_v51  ;;  %v747_v42 = vsel %vm709_vm7, %v705_v3, %v645_v5  ;;  %v4133_v51 = vld [vmem:[%s6217_s5 + $0x110] sm:$0xff]  }
 0x138   :  { %v3289_v60 = vcombine.low %v741_v11, %v743_v19  ;;  %v5097_v14 = vcombine.low %v739_v29, %v741_v11  ;;  %v4141_v3 = vld [vmem:[%s6217_s5 + $0x130] sm:$0xff]  }
 0x13a   :  { %v647_v12 = vpop.permute.xlu1 %646  ;;  %3830 = vmatmul.mubr.msk.bf16.gmra.mrb[12].mxu0 %vm867_vm8, %v3289_v60  ;;  %v643_v16 = vpop.permute.xlu0 %642 }
 0x13b   :  { %v749_v18 = vsel %vm709_vm7, %v708_v39, %v647_v12  ;;  %v745_v4 = vsel %vm709_vm7, %v702_v59, %v643_v16  ;;  %v4139_v59 = vld [vmem:[%s6217_s5 + $0x128] sm:$0xff]   ;;  %v4142_v12 = vld [vmem:[%s6217_s5 + $0xf0] sm:$0xff]   ;;  %v4143_v16 = vld [vmem:[%s6217_s5 + $0x138] sm:$0xff]  }
 0x13c   :  { %v5118_v10 = vcombine.low %v747_v42, %v749_v18  ;;  %v3290_v55 = vcombine.low %v745_v4, %v747_v42  ;;  %v5120_v50 = vcombine.low %v743_v19, %v745_v4  ;;  %v4140_v39 = vld [vmem:[%s6217_s5 + $0xe8] sm:$0xff]   ;;  %v4144_v42 = vld [vmem:[%s6217_s5 + $0xf8] sm:$0xff]   ;;  %v5257_v4 = vld [vmem:[%s6217_s5 + $0x140] sm:$0xff]  }
 0x13e   :  { %v549_v58 = vpop.permute.xlu1 %548  ;;  %3833 = vmatprep.mubr.msk.bf16.mxu0 %vm867_vm8, %v3290_v55  ;;  %v794_v57 = vpop.permute.xlu0 %793 }
 0x13f   :  { %v5129_v40 = vsel %vm709_vm7, %v800_v7, %v794_v57  ;;  %v651_v8 = vsel %vm648_vm6, %v445_v38, %v549_v58 }
 0x140   :  { %v3291_v43 = vcombine.low %v749_v18, %v5129_v40  ;;  %v4145_v18 = vld [vmem:[%s6217_s5 + $0x40] sm:$0xff]  }
 0x142   :  { %v205_v33 = vpop.permute.xlu1 %204  ;;  %3834 = vmatmul.mubr.msk.bf16.gmra.mrb[16].mxu0 %vm867_vm8, %v3291_v43  ;;  %v609_v49 = vpop.permute.xlu0 %608 }
 0x143   :  { %v221_v45 = vmax.bf16 %v205_v33, %v4925_v2  ;;  %v711_v41 = vsel %vm709_vm7, %v651_v8, %v609_v49 }
 0x144   :  { %v3304_v54 = vcombine.low %v711_v41, %v4981_v56  ;;  %v4130_v56 = vld [vmem:[%s6217_s5 + $0xc0] sm:$0xff]  }
 0x145   :  { %v3327_v25 = vcombine.low %v221_v45, %v221_v45  ;;  %3989 = vmatpush3.bf16.msra.mxu1 %v4130_v56 }
 0x146   :  { %3841 = vmatprep.mubr.msk.bf16.mxu0 %vm867_vm8, %v3304_v54  ;;  %v569_v2 = vpop.permute.xlu0 %568  ;;  %v629_v46 = vpop.permute.xlu1 %628  ;;  %3982 = vmatprep.subr.bf16.mxu1 %v4131_v61 }
 0x147   :  { %v1198_v9 = vshrl.u32 %v3327_v25, 16  ;;  %v1201_v52 = vshll.u32 %v3327_v25, 16  ;;  %v681_v23 = vsel %vm648_vm6, %v455_v22, %v569_v2  ;;  %1218 = vrot.lane.b32.xlu0 %v3327_v25, %s4202_s12 }
 0x148   :  { %v731_v62 = vsel %vm709_vm7, %v681_v23, %v629_v46 }
 0x149   :  { %v1200_v28 = vrot.slane %v1198_v9, 7  ;;  %v3309_v29 = vcombine.low %v731_v62, %v5066_v17  ;;  %v1210_v21 = vrot.slane %v1201_v52, 1  ;;  %3990 = vmatpush3.bf16.msra.mxu1 %v4132_v26 }
 0x14a   :  { %3842 = vmatmul.mubr.msk.bf16.vlgmr.msra.gmra.mrb[0].mxu0 %vm867_vm8, %v4995_v53  ;;  %v1217_v37 = vpop.permute.xlu0 %1216  ;;  %v1223_v6 = vpop.permute.xlu1 %1222  ;;  %3983 = vmatprep.subr.bf16.mxu1 %v4133_v51 }
 0x14b   :  { %v1228_v15 = vsel %vm648_vm6, %v1206_v36, %v1217_v37  ;;  %3845 = vmatprep.mubr.msk.bf16.mxu0 %vm867_vm8, %v5012_v47  ;;  %v1211_v17 = vor.u32 %v1210_v21, %v1198_v9  ;;  %3862 = vmatpush3.bf16.msra.mxu0 %v5019_v30  ;;  %v1203_v5 = vor.u32 %v1201_v52, %v1200_v28  ;;  %v4134_v30 = vld [vmem:[%s6217_s5 + $0xd0] sm:$0xff]  }
 0x14c   :  { %v1233_v19 = vsel %vm709_vm7, %v1228_v15, %v1223_v6  ;;  %4119 = vmatprep.subr.msk.bf16.mxu0 %vm525_vm0, %v4128_v20 }
 0x14d   :  { %v3328_v11 = vcombine.low %v5047_v31, %v1233_v19  ;;  %v1215_v60 = vsel %vm4566_vm2, %v1211_v17, 0  ;;  %3991 = vmatpush3.bf16.msra.mxu1 %v4134_v30 }
 0x14e   :  { %1224 = vrot.lane.b32.xlu1 %v1215_v60, %s4203_s17 }
 0x14f   :  { %3864 = vmatpush3.bf16.msra.mxu0 %v1261_v35 }
 0x150   :  { %3573 = vmatprep.subr.bf16.mxu0 %v4129_v44 }
 0x152   :  { %3846 = vmatmul.mubr.msk.bf16.gmra.mrb[4].mxu0 %vm867_vm8, %v5032_v27 }
 0x153   :  { %3849 = vmatprep.mubr.msk.bf16.mxu0 %vm867_vm8, %v5051_v34 }
 0x15a   :  { %3850 = vmatmul.mubr.msk.bf16.gmra.mrb[8].mxu0 %vm867_vm8, %v3309_v29 }
 0x15b   :  { %3853 = vmatprep.mubr.msk.bf16.mxu0 %vm867_vm8, %v5082_v1 }
 0x162   :  { %3854 = vmatmul.mubr.msk.bf16.gmra.mrb[12].mxu0 %vm867_vm8, %v5097_v14 }
 0x163   :  { %3857 = vmatprep.mubr.msk.bf16.mxu0 %vm867_vm8, %v5120_v50 }
 0x16a   :  { %3858 = vmatmul.mubr.msk.bf16.gmra.mrb[16].mxu0 %vm867_vm8, %v5118_v10 }
 0x16b   :  { %3865 = vmatprep.mubr.msk.bf16.mxu0 %vm867_vm8, %v4995_v53 }
 0x172   :  { %3866 = vmatmul.mubr.msk.bf16.vlgmr.msra.gmra.mrb[0].mxu0 %vm867_vm8, %v5012_v47  ;;  %v1207_v47 = vsel %vm4965_vm5, 0, %v1203_v5 }
 0x173   :  { %3869 = vmatprep.mubr.msk.bf16.mxu0 %vm867_vm8, %v5032_v27  ;;  %3574 = vmatpush3.bf16.msra.mxu0 %v4130_v56 }
 0x174   :  { %3575 = vmatprep.subr.bf16.mxu0 %v4131_v61 }
 0x177   :  { %3576 = vmatpush3.bf16.msra.mxu0 %v4132_v26 }
 0x178   :  { %3577 = vmatprep.subr.bf16.mxu0 %v4133_v51 }
 0x17a   :  { %3870 = vmatmul.mubr.msk.bf16.gmra.mrb[4].mxu0 %vm867_vm8, %v5051_v34 }
 0x17b   :  { %3873 = vmatprep.mubr.msk.bf16.mxu0 %vm867_vm8, %v3328_v11  ;;  %3578 = vmatpush3.bf16.msra.mxu0 %v4134_v30 }
 0x182   :  { %3874 = vmatmul.mubr.msk.bf16.gmra.mrb[8].mxu0 %vm867_vm8, %v5082_v1 }
 0x183   :  { %3877 = vmatprep.mubr.msk.bf16.mxu0 %vm867_vm8, %v5097_v14  ;;  %v4135_v14 = vld [vmem:[%s6217_s5 + $0x118] sm:$0xff]  }
 0x184   :  { %3579 = vmatprep.subr.bf16.mxu0 %v4135_v14  ;;  %3984 = vmatprep.subr.bf16.mxu1 %v4135_v14 }
 0x185   :  { %3580 = vmatpush3.bf16.msra.mxu0 %v4136_v0  ;;  %3992 = vmatpush3.bf16.msra.mxu1 %v4136_v0 }
 0x186   :  { %3581 = vmatprep.subr.bf16.mxu0 %v4137_v32  ;;  %3985 = vmatprep.subr.bf16.mxu1 %v4137_v32 }
 0x189   :  { %3582 = vmatpush3.bf16.msra.mxu0 %v4138_v63  ;;  %3993 = vmatpush3.bf16.msra.mxu1 %v4138_v63 }
 0x18a   :  { %3878 = vmatmul.mubr.msk.bf16.gmra.mrb[12].mxu0 %vm867_vm8, %v5120_v50  ;;  %3583 = vmatprep.subr.bf16.mxu0 %v4139_v59  ;;  %v5268_v50 = vld [vmem:[%s6219_s4] ss:$0 sm:$0xff] }
 0x18b   :  { %3881 = vmatprep.mubr.msk.bf16.mxu0 %vm867_vm8, %v5118_v10  ;;  %3986 = vmatprep.subr.bf16.mxu1 %v4139_v59  ;;  %v5263_v10 = vld [vmem:[%s6218_s3] ss:$0 sm:$0xff]  ;;  %6289 = vst [vmem:[#allocation2_spill] sm:$0xff] %v5268_v50 }
 0x18d   :  { %3584 = vmatpush3.bf16.msra.mxu0 %v4140_v39  ;;  %3994 = vmatpush3.bf16.msra.mxu1 %v4140_v39 }
 0x18e   :  { %3585 = vmatprep.subr.bf16.mxu0 %v4141_v3  ;;  %3987 = vmatprep.subr.bf16.mxu1 %v4141_v3 }
 0x191   :  { %3586 = vmatpush3.bf16.msra.mxu0 %v4142_v12  ;;  %3995 = vmatpush3.bf16.msra.mxu1 %v4142_v12 }
 0x192   :  { %3587 = vmatprep.subr.bf16.mxu0 %v4143_v16  ;;  %3988 = vmatprep.subr.bf16.mxu1 %v4143_v16 }
 0x195   :  { %3588 = vmatpush3.bf16.msra.mxu0 %v4144_v42  ;;  %3996 = vmatpush3.bf16.msra.mxu1 %v4144_v42 }
 0x196   :  { %3653 = vmatprep.subr.bf16.mxu0 %v4145_v18  ;;  %3885 = vmatprep.subr.bf16.mxu1 %v5257_v4 }
 0x1b9   :  { %v1219_v53 = vpop.permute.xlu0 %1218 }
 0x1ba   :  { %v1231_v27 = vsel %vm648_vm6, %v1207_v47, %v1219_v53 }
 0x1c0   :  { %v1225_v31 = vpop.permute.xlu1 %1224 }
 0x1c1   :  { %v1235_v34 = vsel %vm709_vm7, %v1231_v27, %v1225_v31 }
 0x1c2   :  { %v3329_v1 = vcombine.low %v5129_v40, %v1235_v34 }
 0x1c4   :  { %3882 = vmatmul.mubr.msk.bf16.gmra.mrb[16].mxu0 %vm867_vm8, %v3329_v1 }
 0x245   :  { %v3867_v55 = vpop.f32.mrb[0].mxu0 }
 0x246   :  { %v1405_v48 = vmul.f32 %v3867_v55, %v5263_v10  ;;  %v1297_v7 = vpop.f32.mrb[1].mxu0 }
 0x247   :  { %v1403_v58 = vmul.f32 %v5263_v10, %v1297_v7  ;;  %v3868_v57 = vpop.f32.mrb[2].mxu0 }
 0x248   :  { %v1432_v40 = vadd.f32 %v5268_v50, %v1405_v48  ;;  %v1406_v43 = vmul.f32 %v3868_v57, %v5263_v10  ;;  %v1300_v38 = vpop.f32.mrb[3].mxu0 }
 0x249   :  { %v1430_v8 = vadd.f32 %v5268_v50, %v1403_v58  ;;  %v1404_v33 = vmul.f32 %v5263_v10, %v1300_v38 }
 0x24a   :  { %v5276_v49 = vmax.f32 %v1432_v40, 0.0  ;;  %v1433_v45 = vadd.f32 %v5268_v50, %v1406_v43 }
 0x24b   :  { %v1450_v41 = vmax.f32 %v1430_v8, 0.0  ;;  %v1431_v54 = vadd.f32 %v5268_v50, %v1404_v33 }
 0x24c   :  { %v5282_v25 = vpack.c.bf16 %v5276_v49, %v5276_v49  ;;  %v5284_v20 = vmax.f32 %v1433_v45, 0.0 }
 0x24d   :  { %v5286_v44 = vmul.f32 0.0, %v1450_v41  ;;  %v5288_v22 = vmax.f32 %v1431_v54, 0.0  ;;  %v3871_v2 = vpop.f32.mrb[4].mxu0  ;;  %v4146_v41 = vld [vmem:[%s6217_s5] sm:$0xff]  }
 0x24e   :  { %v6243_v46 = vshrl.u32 %v5282_v25, 16  ;;  %v6249_v56 = vshll.u32 %v5282_v25, 16  ;;  %v5294_v9 = vpack.c.bf16 %v5284_v20, %v5284_v20  ;;  %v1409_v52 = vmul.f32 %v3871_v2, %v5263_v10  ;;  %v1313_v23 = vpop.f32.mrb[5].mxu0 }
 0x24f   :  { %v5299_v62 = vpack.c.bf16 %v5286_v44, %v5286_v44  ;;  %v5303_v61 = vpack.c.bf16 %v5288_v22, %v5288_v22  ;;  %v1407_v28 = vmul.f32 %v5263_v10, %v1313_v23  ;;  %v3872_v29 = vpop.f32.mrb[6].mxu0  ;;  %v3472_v36 = vpack.c.bf16 %v5276_v49, %v5288_v22 }
 0x250   :  { %v1517_v21 = vrot.slane %v6243_v46, 7  ;;  %v6242_v26 = vshrl.u32 %v5294_v9, 16  ;;  %v1436_v37 = vadd.f32 %v5268_v50, %v1409_v52  ;;  %v1410_v6 = vmul.f32 %v3872_v29, %v5263_v10  ;;  %v1316_v15 = vpop.f32.mrb[7].mxu0 }
 0x251   :  { %v6239_v17 = vshrl.u32 %v5299_v62, 16  ;;  %v6240_v35 = vshll.u32 %v5299_v62, 16  ;;  %v6245_v5 = vshrl.u32 %v5303_v61, 16  ;;  %v6252_v51 = vshll.u32 %v5303_v61, 16  ;;  %2162 = vmatprep.mubr.bf16.mxu0 %v3472_v36 }
 0x252   :  { %v1520_v19 = vor.u32 %v6249_v56, %v1517_v21  ;;  %v5319_v11 = vmax.f32 %v1436_v37, 0.0  ;;  %v1434_v60 = vadd.f32 %v5268_v50, %v1407_v28  ;;  %v1437_v30 = vadd.f32 %v5268_v50, %v1410_v6  ;;  %v4147_v28 = vld [vmem:[%s6217_s5 + $0x48] sm:$0xff]  }
 0x253   :  { %v1503_v53 = vrot.slane %v6239_v17, 7  ;;  %v1510_v47 = vrot.slane %v6245_v5, 7  ;;  %v1408_v27 = vmul.f32 %v5263_v10, %v1316_v15  ;;  %v1524_v31 = vrot.slane %v6242_v26, 7 }
 0x254   :  { %v5332_v34 = vpack.c.bf16 %v5319_v11, %v5319_v11  ;;  %v5334_v1 = vmax.f32 %v1434_v60, 0.0  ;;  %v5336_v14 = vmax.f32 %v1437_v30, 0.0  ;;  %v5340_v0 = vsel %vm4965_vm5, 0, %v1520_v19 }
 0x255   :  { %v5344_v32 = vor.u32 %v6240_v35, %v1503_v53  ;;  %v1513_v63 = vor.u32 %v6252_v51, %v1510_v47  ;;  %v1435_v59 = vadd.f32 %v5268_v50, %v1408_v27  ;;  %v3875_v39 = vpop.f32.mrb[8].mxu0  ;;  %v6248_v3 = vshll.u32 %v5294_v9, 16  ;;  %v4148_v47 = vld [vmem:[%s6217_s5 + $0x8] sm:$0xff]  }
 0x256   :  { %v6244_v12 = vshrl.u32 %v5332_v34, 16  ;;  %v5353_v16 = vpack.c.bf16 %v5334_v1, %v5334_v1  ;;  %v5357_v42 = vpack.c.bf16 %v5336_v14, %v5336_v14  ;;  %v1413_v18 = vmul.f32 %v3875_v39, %v5263_v10  ;;  %v1329_v55 = vpop.f32.mrb[9].mxu0 }
 0x257   :  { %v5363_v7 = vmax.f32 %v1435_v59, 0.0  ;;  %v1411_v58 = vmul.f32 %v5263_v10, %v1329_v55  ;;  %v3876_v57 = vpop.f32.mrb[10].mxu0  ;;  %v5368_v40 = vsel %vm4965_vm5, 0, %v1513_v63  ;;  %v3473_v21 = vpack.c.bf16 %v5334_v1, %v5284_v20 }
 0x258   :  { %v6246_v43 = vshrl.u32 %v5353_v16, 16  ;;  %v6254_v38 = vshrl.u32 %v5357_v42, 16  ;;  %v1440_v8 = vadd.f32 %v5268_v50, %v1413_v18  ;;  %v1414_v33 = vmul.f32 %v3876_v57, %v5263_v10  ;;  %v1332_v45 = vpop.f32.mrb[11].mxu0  ;;  %v4149_v18 = vld [vmem:[%s6217_s5 + $0x50] sm:$0xff]  }
 0x259   :  { %v5379_v54 = vpack.c.bf16 %v5363_v7, %v5363_v7  ;;  %v1438_v2 = vadd.f32 %v5268_v50, %v1411_v58  ;;  %v1412_v52 = vmul.f32 %v5263_v10, %v1332_v45  ;;  %v3344_v23 = vcombine.low %v5368_v40, %v5340_v0 }
 0x25a   :  { %v1460_v29 = vmax.f32 %v1440_v8, 0.0  ;;  %v1441_v36 = vadd.f32 %v5268_v50, %v1414_v33  ;;  %v1527_v37 = vor.u32 %v6248_v3, %v1524_v31  ;;  %v1531_v60 = vrot.slane %v6246_v43, 7 }
 0x25b   :  { %v6241_v6 = vshrl.u32 %v5379_v54, 16  ;;  %v5394_v15 = vmax.f32 %v1438_v2, 0.0  ;;  %v1439_v19 = vadd.f32 %v5268_v50, %v1412_v52  ;;  %2163 = vmatmul.mubr.bf16.vlgmr.msra.gmra.mrb[20].mxu0 %v3344_v23  ;;  %v1532_v27 = vshll.u32 %v5353_v16, 16 }
 0x25c   :  { %v5399_v30 = vmul.f32 0.0, %v1460_v29  ;;  %v5401_v53 = vmax.f32 %v1441_v36, 0.0  ;;  %2170 = vmatprep.mubr.bf16.mxu0 %v3473_v21  ;;  %3654 = vmatpush3.bf16.msra.mxu0 %v4146_v41  ;;  %v5409_v31 = vsel %vm4965_vm5, 0, %v1527_v37  ;;  %v3474_v55 = vpack.c.bf16 %v5319_v11, %v5363_v7 }
 0x25d   :  { %v5413_v63 = vpack.c.bf16 %v5394_v15, %v5394_v15  ;;  %v1459_v59 = vmax.f32 %v1439_v19, 0.0  ;;  %v3879_v39 = vpop.f32.mrb[12].mxu0  ;;  %3655 = vmatprep.subr.bf16.mxu0 %v4147_v28  ;;  %v1538_v58 = vrot.slane %v6241_v6, 7  ;;  %v1534_v41 = vor.u32 %v1532_v27, %v1531_v60  ;;  %v4150_v60 = vld [vmem:[%s6217_s5 + $0x10] sm:$0xff]  }
 0x25e   :  { %v5424_v57 = vpack.c.bf16 %v5399_v30, %v5399_v30  ;;  %v5428_v8 = vpack.c.bf16 %v5401_v53, %v5401_v53  ;;  %v1417_v33 = vmul.f32 %v3879_v39, %v5263_v10  ;;  %v1345_v45 = vpop.f32.mrb[13].mxu0  ;;  %v5435_v29 = vrot.slane %v1532_v27, 1 }
 0x25f   :  { %v6255_v2 = vshrl.u32 %v5413_v63, 16  ;;  %v5432_v52 = vmul.f32 0.0, %v1459_v59  ;;  %v1415_v23 = vmul.f32 %v5263_v10, %v1345_v45  ;;  %v3880_v28 = vpop.f32.mrb[14].mxu0  ;;  %v5458_v35 = vsel %vm4965_vm5, 0, %v1534_v41 }
 0x260   :  { %v6250_v37 = vshrl.u32 %v5428_v8, 16  ;;  %v1444_v19 = vadd.f32 %v5268_v50, %v1417_v33  ;;  %3656 = vmatpush3.bf16.msra.mxu0 %v4148_v47  ;;  %v1348_v39 = vpop.f32.mrb[15].mxu0  ;;  %v1418_v45 = vmul.f32 %v3880_v28, %v5263_v10  ;;  %v4151_v47 = vld [vmem:[%s6217_s5 + $0x58] sm:$0xff]   ;;  %v6247_v6 = vshll.u32 %v5379_v54, 16 }
 0x261   :  { %v5446_v59 = vpack.c.bf16 %v5432_v52, %v5432_v52  ;;  %v1442_v27 = vadd.f32 %v5268_v50, %v1415_v23  ;;  %v1416_v17 = vmul.f32 %v5263_v10, %v1348_v39  ;;  %3657 = vmatprep.subr.bf16.mxu0 %v4149_v18  ;;  %v1545_v23 = vrot.slane %v6244_v12, 7  ;;  %v4152_v28 = vld [vmem:[%s6217_s5 + $0x18] sm:$0xff]  }
 0x262   :  { %v5454_v33 = vmax.f32 %v1444_v19, 0.0  ;;  %v1445_v26 = vadd.f32 %v5268_v50, %v1418_v45  ;;  %v3347_v46 = vcombine.low %v5409_v31, %v5458_v35  ;;  %v6251_v12 = vshll.u32 %v5332_v34, 16 }
 0x263   :  { %v5465_v18 = vmax.f32 %v1442_v27, 0.0  ;;  %v1443_v41 = vadd.f32 %v5268_v50, %v1416_v17  ;;  %v1541_v27 = vor.u32 %v6247_v6, %v1538_v58  ;;  %v6257_v56 = vshll.u32 %v5428_v8, 16 }
 0x264   :  { %v5470_v19 = vpack.c.bf16 %v5454_v33, %v5454_v33  ;;  %3658 = vmatpush3.bf16.msra.mxu0 %v4150_v60  ;;  %v5484_v39 = vmax.f32 %v1445_v26, 0.0  ;;  %v4153_v60 = vld [vmem:[%s6217_s5 + $0x60] sm:$0xff]   ;;  %v3475_v26 = vpack.c.bf16 %v5394_v15, %v5336_v14  ;;  %v1548_v3 = vor.u32 %v6251_v12, %v1545_v23 }
 0x265   :  { %v5482_v45 = vpack.c.bf16 %v5465_v18, %v5465_v18  ;;  %3659 = vmatprep.subr.bf16.mxu0 %v4151_v47  ;;  %v3476_v17 = vpack.c.bf16 %v5465_v18, %v5401_v53  ;;  %v5493_v43 = vmax.f32 %v1443_v41, 0.0  ;;  %2171 = vmatmul.mubr.bf16.gmra.mrb[24].mxu0 %v3347_v46  ;;  %v1633_v58 = vsel %vm4965_vm5, 0, %v1541_v27  ;;  %v4154_v27 = vld [vmem:[%s6217_s5 + $0x20] sm:$0xff]  }
 0x266   :  { %v5502_v6 = vpack.c.bf16 %v5484_v39, %v5484_v39  ;;  %2178 = vmatprep.mubr.bf16.mxu0 %v3474_v55  ;;  %v1566_v46 = vrot.slane %v6250_v37, 7  ;;  %v1634_v37 = vsel %vm4965_vm5, 0, %v1548_v3  ;;  %v1552_v21 = vrot.slane %v6254_v38, 7  ;;  %v4156_v38 = vld [vmem:[%s6217_s5 + $0x28] sm:$0xff]  }
 0x267   :  { %v6253_v47 = vshrl.u32 %v5482_v45, 16  ;;  %2194 = vmatprep.mubr.bf16.mxu1 %v3476_v17  ;;  %v5510_v41 = vpack.c.bf16 %v5493_v43, %v5493_v43  ;;  %v6256_v55 = vshll.u32 %v5482_v45, 16  ;;  %v3477_v17 = vpack.c.bf16 %v5454_v33, %v5493_v43 }
 0x268   :  { %3660 = vmatpush3.bf16.msra.mxu0 %v4152_v28  ;;  %v4155_v28 = vld [vmem:[%s6217_s5 + $0x68] sm:$0xff]   ;;  %v3350_v36 = vcombine.low %v1633_v58, %v1634_v37  ;;  %v1569_v23 = vor.u32 %v6257_v56, %v1566_v46  ;;  %v1553_v48 = vshll.u32 %v5357_v42, 16  ;;  %v6261_v5 = vshll.u32 %v5413_v63, 16 }
 0x269   :  { %3661 = vmatprep.subr.bf16.mxu0 %v4153_v60  ;;  %v1573_v12 = vrot.slane %v6253_v47, 7  ;;  %v6260_v51 = vshrl.u32 %v5510_v41, 16  ;;  %v1855_v60 = vrot.slane %v6255_v2, 7  ;;  %v6290_v47 = vshrl.u32 %v5470_v19, 16 }
 0x26a   :  { %v5545_v46 = vsel %vm4965_vm5, 0, %v1569_v23  ;;  %v4157_v23 = vld [vmem:[%s6217_s5 + $0x70] sm:$0xff]  }
 0x26b   :  { %v1576_v3 = vor.u32 %v6256_v55, %v1573_v12  ;;  %v1555_v12 = vor.u32 %v1553_v48, %v1552_v21  ;;  %v1580_v2 = vrot.slane %v6260_v51, 7  ;;  %v6263_v55 = vshll.u32 %v5510_v41, 16 }
 0x26c   :  { %3662 = vmatpush3.bf16.msra.mxu0 %v4154_v27  ;;  %v1858_v56 = vor.u32 %v6261_v5, %v1855_v60  ;;  %v1587_v50 = vrot.slane %v6290_v47, 7  ;;  %v6262_v21 = vshll.u32 %v5470_v19, 16  ;;  %v6291_v60 = vsel %vm4965_vm5, 0, %v5344_v32  ;;  %v4162_v32 = vld [vmem:[%s6217_s5 + $0x148] sm:$0xff]  }
 0x26d   :  { %3663 = vmatprep.subr.bf16.mxu0 %v4155_v28  ;;  %v1638_v27 = vsel %vm4965_vm5, 0, %v1576_v3  ;;  %2179 = vmatmul.mubr.bf16.gmra.mrb[28].mxu0 %v3350_v36  ;;  %v1635_v28 = vsel %vm4965_vm5, 0, %v1555_v12  ;;  %v1583_v3 = vor.u32 %v6263_v55, %v1580_v2  ;;  %v5572_v5 = vcombine.low %v6291_v60, %v5368_v40 }
 0x26e   :  { %v3356_v51 = vcombine.low %v5545_v46, %v1638_v27  ;;  %2186 = vmatprep.mubr.bf16.mxu0 %v3475_v26  ;;  %v5576_v47 = vsel %vm4965_vm5, 0, %v1858_v56  ;;  %v1590_v36 = vor.u32 %v6262_v21, %v1587_v50  ;;  %v5582_v12 = vpack.c.bf16 %v5284_v20, %v5276_v49  ;;  %v4158_v50 = vld [vmem:[%s6217_s5 + $0x30] sm:$0xff]  }
 0x26f   :  { %v5586_v2 = vcombine.low %v5340_v0, %v5409_v31  ;;  %v3353_v56 = vcombine.low %v1635_v28, %v5576_v47  ;;  %v1639_v49 = vsel %vm4965_vm5, 0, %v1583_v3  ;;  %v5599_v20 = vpack.c.bf16 %v5363_v7, %v5334_v1 }
 0x270   :  { %3664 = vmatpush3.bf16.msra.mxu0 %v4156_v38  ;;  %2195 = vmatmul.mubr.bf16.vlgmr.msra.gmra.mrb[0].mxu1 %v3356_v51  ;;  %v5602_v0 = vcombine.low %v5458_v35, %v1633_v58  ;;  %v4159_v51 = vld [vmem:[%s6217_s5 + $0x78] sm:$0xff]   ;;  %v1640_v40 = vsel %vm4965_vm5, 0, %v1590_v36  ;;  %v5611_v38 = vpack.c.bf16 %v5336_v14, %v5319_v11  ;;  %v5613_v31 = vcombine.low %v1634_v37, %v1635_v28  ;;  %v4163_v11 = vld [vmem:[%s6217_s5 + $0x150] sm:$0xff]  }
 0x271   :  { %2202 = vmatprep.mubr.bf16.mxu1 %v3477_v17  ;;  %3665 = vmatprep.subr.bf16.mxu0 %v4157_v23  ;;  %v3359_v35 = vcombine.low %v1639_v49, %v1640_v40  ;;  %v6292_v7 = vshrl.u32 %v5424_v57, 16  ;;  %v5622_v26 = vpack.c.bf16 %v5493_v43, %v5465_v18  ;;  %v5624_v17 = vcombine.low %v1638_v27, %v1639_v49  ;;  %v4160_v18 = vld [vmem:[%s6217_s5 + $0x38] sm:$0xff]  }
 0x272   :  { %3886 = vmatpush3.bf16.msra.mxu1 %v5257_v4  ;;  %v5631_v14 = vpack.c.bf16 %v5484_v39, %v5454_v33  ;;  %v6293_v4 = vshrl.u32 %v5502_v6, 16  ;;  %v1595_v23 = vshll.u32 %v5502_v6, 16  ;;  %v6294_v28 = vshll.u32 %v5303_v61, 16 }
 0x273   :  { %v1559_v58 = vrot.slane %v6292_v7, 7  ;;  %3887 = vmatprep.subr.bf16.mxu1 %v4162_v32  ;;  %v6295_v27 = vshll.u32 %v5424_v57, 16  ;;  %v6296_v60 = vshll.u32 %v5282_v25, 16  ;;  %v6297_v36 = vshll.u32 %v5294_v9, 16 }
 0x274   :  { %v1594_v37 = vrot.slane %v6293_v4, 7  ;;  %v1646_v43 = vrot.slane %v6294_v28, 1  ;;  %3666 = vmatpush3.bf16.msra.mxu0 %v4158_v50  ;;  %v6298_v7 = vshrl.u32 %v5353_v16, 16  ;;  %v6299_v50 = vshrl.u32 %v5303_v61, 16 }
 0x275   :  { %v1562_v3 = vor.u32 %v6295_v27, %v1559_v58  ;;  %v1648_v33 = vrot.slane %v6296_v60, 1  ;;  %v1650_v49 = vrot.slane %v6297_v36, 1  ;;  %3667 = vmatprep.subr.bf16.mxu0 %v4159_v51  ;;  %v6300_v21 = vshll.u32 %v5379_v54, 16  ;;  %2187 = vmatmul.mubr.bf16.gmra.mrb[32].mxu0 %v3353_v56 }
 0x276   :  { %v1653_v4 = vor.u32 %v5435_v29, %v6298_v7  ;;  %v1597_v28 = vor.u32 %v1595_v23, %v1594_v37  ;;  %v1647_v1 = vor.u32 %v1646_v43, %v6299_v50  ;;  %v6301_v58 = vshll.u32 %v5332_v34, 16  ;;  %3888 = vmatpush3.bf16.msra.mxu1 %v4162_v32 }
 0x277   :  { %v1654_v55 = vrot.slane %v6300_v21, 1  ;;  %v1636_v60 = vsel %vm4965_vm5, 0, %v1562_v3  ;;  %v6302_v16 = vshrl.u32 %v5282_v25, 16  ;;  %v6303_v29 = vshrl.u32 %v5294_v9, 16  ;;  %3889 = vmatprep.subr.bf16.mxu1 %v4163_v11  ;;  %v4164_v25 = vld [vmem:[%s6217_s5 + $0x158] sm:$0xff]  }
 0x278   :  { %v1656_v27 = vrot.slane %v6301_v58, 1  ;;  %v5664_v61 = vsel %vm4566_vm2, %v1653_v4, 0  ;;  %v6304_v21 = vpack.c.bf16 %v5288_v22, %v5286_v44  ;;  %v5670_v56 = vcombine.low %v1636_v60, %v5545_v46  ;;  %3668 = vmatpush3.bf16.msra.mxu0 %v4160_v18  ;;  %2203 = vmatmul.mubr.bf16.gmra.mrb[4].mxu1 %v3359_v35 }
 0x279   :  { %v1649_v36 = vor.u32 %v1648_v33, %v6302_v16  ;;  %v1651_v51 = vor.u32 %v1650_v49, %v6303_v29  ;;  %v5677_v9 = vsel %vm4965_vm5, 0, %v1597_v28  ;;  %v5681_v32 = vsel %vm4566_vm2, %v1647_v1, 0  ;;  %v4165_v28 = vld [vmem:[%s6217_s5 + $0x160] sm:$0xff]  }
 0x27a   :  { %2548 = vmatprep.mubr.bf16.mxu0 %v6304_v21  ;;  %v6305_v37 = vshrl.u32 %v5379_v54, 16  ;;  %v5686_v22 = vcombine.low %v1640_v40, %v5677_v9  ;;  %v6306_v3 = vshrl.u32 %v5332_v34, 16  ;;  %3890 = vmatpush3.bf16.msra.mxu1 %v4163_v11  ;;  %v1658_v34 = vrot.slane %v1553_v48, 1 }
 0x27b   :  { %v5690_v46 = vsel %vm4566_vm2, %v1649_v36, 0  ;;  %v5694_v43 = vsel %vm4566_vm2, %v1651_v51, 0  ;;  %v6307_v33 = vshll.u32 %v5413_v63, 16  ;;  %v6308_v7 = vshll.u32 %v5428_v8, 16  ;;  %3891 = vmatprep.subr.bf16.mxu1 %v4164_v25 }
 0x27c   :  { %v1655_v44 = vor.u32 %v1654_v55, %v6305_v37  ;;  %v1657_v1 = vor.u32 %v1656_v27, %v6306_v3  ;;  %v5704_v40 = vcombine.low %v5690_v46, %v5694_v43  ;;  %v6309_v50 = vshll.u32 %v5482_v45, 16 }
 0x27d   :  { %v1870_v49 = vrot.slane %v6307_v33, 1  ;;  %v1662_v4 = vrot.slane %v6308_v7, 1  ;;  %v6310_v27 = vshll.u32 %v5510_v41, 16  ;;  %v6311_v60 = vshll.u32 %v5470_v19, 16  ;;  %2549 = vmatmul.mubr.bf16.vlgmr.msra.gmra.mrb[36].mxu0 %v5572_v5  ;;  %v4166_v5 = vld [vmem:[%s6217_s5 + $0x168] sm:$0xff]  }
 0x27e   :  { %v5708_v35 = vsel %vm4566_vm2, %v1655_v44, 0  ;;  %v5712_v18 = vsel %vm4566_vm2, %v1657_v1, 0  ;;  %v1664_v58 = vrot.slane %v6309_v50, 1  ;;  %v6312_v36 = vshrl.u32 %v5357_v42, 16  ;;  %3892 = vmatpush3.bf16.msra.mxu1 %v4164_v25  ;;  %2556 = vmatprep.mubr.bf16.mxu0 %v5582_v12 }
 0x27f   :  { %v1666_v48 = vrot.slane %v6310_v27, 1  ;;  %v1668_v16 = vrot.slane %v6311_v60, 1  ;;  %v6313_v51 = vshrl.u32 %v5413_v63, 16  ;;  %v6314_v37 = vshrl.u32 %v5428_v8, 16  ;;  %3893 = vmatprep.subr.bf16.mxu1 %v4165_v28 }
 0x280   :  { %v1659_v29 = vor.u32 %v1658_v34, %v6312_v36  ;;  %v1670_v3 = vrot.slane %v1595_v23, 1  ;;  %v6315_v1 = vshrl.u32 %v5482_v45, 16  ;;  %v6316_v7 = vshrl.u32 %v5510_v41, 16 }
 0x281   :  { %v1871_v21 = vor.u32 %v1870_v49, %v6313_v51  ;;  %v1663_v44 = vor.u32 %v1662_v4, %v6314_v37  ;;  %v6317_v27 = vshrl.u32 %v5470_v19, 16  ;;  %v6318_v60 = vshll.u32 %v5299_v62, 16 }
 0x282   :  { %v1665_v33 = vor.u32 %v1664_v58, %v6315_v1  ;;  %v1667_v50 = vor.u32 %v1666_v48, %v6316_v7  ;;  %v5748_v63 = vsel %vm4566_vm2, %v1659_v29, 0  ;;  %v6319_v19 = vshrl.u32 %v5502_v6, 16  ;;  %3894 = vmatpush3.bf16.msra.mxu1 %v4165_v28 }
 0x283   :  { %v1669_v11 = vor.u32 %v1668_v16, %v6317_v27  ;;  %v1644_v42 = vrot.slane %v6318_v60, 1  ;;  %v5752_v8 = vsel %vm4566_vm2, %v1871_v21, 0  ;;  %v5756_v45 = vsel %vm4566_vm2, %v1663_v44, 0  ;;  %3895 = vmatprep.subr.bf16.mxu1 %v4166_v5 }
 0x284   :  { %v1671_v41 = vor.u32 %v1670_v3, %v6319_v19  ;;  %v5768_v25 = vsel %vm4566_vm2, %v1665_v33, 0  ;;  %v5772_v34 = vsel %vm4566_vm2, %v1667_v50, 0  ;;  %v6320_v48 = vshrl.u32 %v5299_v62, 16  ;;  %v4167_v33 = vld [vmem:[%s6217_s5 + $0x170] sm:$0xff]  }
 0x285   :  { %v5776_v6 = vsel %vm4566_vm2, %v1669_v11, 0  ;;  %v5790_v36 = vcombine.low %v5664_v61, %v5708_v35  ;;  %v5794_v11 = vcombine.low %v5712_v18, %v5748_v63  ;;  %v6321_v29 = vshll.u32 %v5424_v57, 16  ;;  %2557 = vmatmul.mubr.bf16.gmra.mrb[40].mxu0 %v5586_v2 }
 0x286   :  { %v5784_v58 = vsel %vm4566_vm2, %v1671_v41, 0  ;;  %v1645_v16 = vor.u32 %v1644_v42, %v6320_v48  ;;  %v5800_v21 = vcombine.low %v5768_v25, %v5772_v34  ;;  %v6322_v3 = vshrl.u32 %v5446_v59, 16  ;;  %3896 = vmatpush3.bf16.msra.mxu1 %v4166_v5  ;;  %2564 = vmatprep.mubr.bf16.mxu0 %v5599_v20 }
 0x287   :  { %v1660_v51 = vrot.slane %v6321_v29, 1  ;;  %v5806_v37 = vcombine.low %v5776_v6, %v5784_v58  ;;  %v6323_v7 = vshrl.u32 %v5424_v57, 16  ;;  %v6324_v27 = vshll.u32 %v5446_v59, 16  ;;  %3897 = vmatprep.subr.bf16.mxu1 %v4167_v33 }
 0x288   :  { %v1692_v62 = vsel %vm4566_vm2, %v1645_v16, 0  ;;  %v2713_v1 = vrot.slane %v6322_v3, 7  ;;  %v6326_v48 = vmov %v6322_v3  ;;  %v5849_v3 = vld [vmem:[%s6217_s5 + $0x80] sm:$0xff]   ;;  %v6331_v13 = vcombine.low %v5694_v43, %v5664_v61 }
 0x289   :  { %v5816_v28 = vcombine.low %v1692_v62, %v5681_v32  ;;  %v1661_v50 = vor.u32 %v1660_v51, %v6323_v7  ;;  %v2728_v60 = vrot.slane %v6324_v27, 1  ;;  %v6325_v42 = vmov %v6324_v27  ;;  %v4168_v51 = vld [vmem:[%s6217_s5 + $0x178] sm:$0xff]  }
 0x28a   :  { %v2716_v19 = vor.u32 %v6325_v42, %v2713_v1  ;;  %3898 = vmatpush3.bf16.msra.mxu1 %v4167_v33  ;;  %v6333_v61 = vcombine.low %v5748_v63, %v5752_v8  ;;  %v6334_v43 = vcombine.low %v5756_v45, %v5768_v25  ;;  %v6335_v63 = vcombine.low %v5772_v34, %v5776_v6  ;;  %v4177_v25 = vld [vmem:[%s6217_s5 + $0x1c0] sm:$0xff]   ;;  %v4179_v6 = vld [vmem:[%s6217_s5 + $0x1c8] sm:$0xff]  }
 0x28b   :  { %v1700_v41 = vsel %vm4566_vm2, %v1661_v50, 0  ;;  %v2729_v16 = vor.u32 %v2728_v60, %v6326_v48  ;;  %3899 = vmatprep.subr.bf16.mxu1 %v4168_v51  ;;  %v6329_v60 = vld [vmem:[#allocation2_spill] sm:$0xff] }
 0x28c   :  { %v5830_v29 = vcombine.low %v1700_v41, %v5756_v45  ;;  %v2726_v57 = vsel %vm4965_vm5, 0, %v2716_v19  ;;  %v4176_v45 = vld [vmem:[%s6217_s5 + $0xb8] sm:$0xff]   ;;  %v4178_v34 = vld [vmem:[%s6217_s5 + $0x180] sm:$0xff]  }
 0x28d   :  { %v5839_v62 = vcombine.low %v5576_v47, %v2726_v57  ;;  %v2734_v59 = vsel %vm4566_vm2, %v2729_v16, 0  ;;  %2565 = vmatmul.mubr.bf16.gmra.mrb[44].mxu0 %v5602_v0  ;;  %v6328_v47 = vpack.c.bf16 %v5401_v53, %v5399_v30 }
 0x28e   :  { %v5844_v5 = vcombine.low %v5752_v8, %v2734_v59  ;;  %3900 = vmatpush3.bf16.msra.mxu1 %v4168_v51  ;;  %2572 = vmatprep.mubr.bf16.mxu0 %v5611_v38  ;;  %v4175_v8 = vld [vmem:[%s6217_s5 + $0xb0] sm:$0xff]  }
 0x28f   :  { %3917 = vmatprep.subr.bf16.mxu1 %v5849_v3 }
 0x290   :  { %6327 = vst [vmem:[#allocation3_spill] sm:$0xff] %v5844_v5 }
 0x295   :  { %2573 = vmatmul.mubr.bf16.gmra.mrb[48].mxu0 %v5613_v31 }
 0x296   :  { %2580 = vmatprep.mubr.bf16.mxu0 %v6328_v47 }
 0x297   :  { %v3883_v1 = vpop.f32.mrb[16].mxu0 }
 0x298   :  { %v1421_v33 = vmul.f32 %v3883_v1, %v5263_v10  ;;  %v1361_v7 = vpop.f32.mrb[17].mxu0 }
 0x299   :  { %v1419_v50 = vmul.f32 %v5263_v10, %v1361_v7  ;;  %v3884_v27 = vpop.f32.mrb[18].mxu0 }
 0x29a   :  { %v1448_v42 = vadd.f32 %v6329_v60, %v1421_v33  ;;  %v1422_v19 = vmul.f32 %v3884_v27, %v5263_v10  ;;  %v1364_v41 = vpop.f32.mrb[19].mxu0 }
 0x29b   :  { %v1446_v48 = vadd.f32 %v6329_v60, %v1419_v50  ;;  %v1420_v16 = vmul.f32 %v5263_v10, %v1364_v41 }
 0x29c   :  { %v5864_v57 = vmax.f32 %v1448_v42, 0.0  ;;  %v1449_v30 = vadd.f32 %v6329_v60, %v1422_v19 }
 0x29d   :  { %v1466_v53 = vmax.f32 %v1446_v48, 0.0  ;;  %v1447_v51 = vadd.f32 %v6329_v60, %v1420_v16  ;;  %2581 = vmatmul.mubr.bf16.gmra.mrb[52].mxu0 %v5670_v56 }
 0x29e   :  { %v1498_v59 = vpack.c.bf16 %v5864_v57, %v5864_v57  ;;  %v1469_v47 = vmax.f32 %v1449_v30, 0.0  ;;  %2588 = vmatprep.mubr.bf16.mxu0 %v5622_v26 }
 0x29f   :  { %v1496_v1 = vpack.c.bf16 %v1466_v53, %v1466_v53  ;;  %v1467_v33 = vmax.f32 %v1447_v51, 0.0  ;;  %v3478_v7 = vpack.c.bf16 %v1466_v53, %v5484_v39 }
 0x2a0   :  { %v1860_v10 = vshrl.u32 %v1498_v59, 16  ;;  %v5873_v50 = vmul.f32 0.0, %v1469_v47  ;;  %v1863_v27 = vshll.u32 %v1498_v59, 16 }
 0x2a1   :  { %v1599_v42 = vshrl.u32 %v1496_v1, 16  ;;  %v1497_v19 = vpack.c.bf16 %v1467_v33, %v1467_v33  ;;  %2210 = vmatprep.mubr.bf16.mxu1 %v3478_v7  ;;  %v1602_v60 = vshll.u32 %v1496_v1, 16  ;;  %v3479_v41 = vpack.c.bf16 %v5864_v57, %v1467_v33 }
 0x2a2   :  { %v1499_v48 = vpack.c.bf16 %v5873_v50, %v5873_v50  ;;  %v5878_v56 = vpack.c.bf16 %v1467_v33, %v1466_v53  ;;  %v1862_v16 = vrot.slane %v1860_v10, 7  ;;  %v1872_v30 = vrot.slane %v1863_v27, 1 }
 0x2a3   :  { %v1606_v51 = vshrl.u32 %v1497_v19, 16  ;;  %v1601_v44 = vrot.slane %v1599_v42, 7  ;;  %v1609_v39 = vshll.u32 %v1497_v19, 16  ;;  %v1672_v4 = vrot.slane %v1602_v60, 1 }
 0x2a4   :  { %v2718_v47 = vshrl.u32 %v1499_v48, 16  ;;  %v2721_v49 = vshll.u32 %v1499_v48, 16  ;;  %v1865_v59 = vor.u32 %v1863_v27, %v1862_v16  ;;  %v1873_v23 = vor.u32 %v1872_v30, %v1860_v10 }
 0x2a5   :  { %v1604_v55 = vor.u32 %v1602_v60, %v1601_v44  ;;  %v1608_v7 = vrot.slane %v1606_v51, 7  ;;  %v1673_v1 = vor.u32 %v1672_v4, %v1599_v42  ;;  %v1674_v54 = vrot.slane %v1609_v39, 1  ;;  %2589 = vmatmul.mubr.bf16.gmra.mrb[56].mxu0 %v5624_v17 }
 0x2a6   :  { %v3489_v53 = vpack.c.bf16 %v5873_v50, %v5864_v57  ;;  %v2720_v33 = vrot.slane %v2718_v47, 7  ;;  %2596 = vmatprep.mubr.bf16.mxu0 %v5631_v14  ;;  %v2730_v60 = vrot.slane %v2721_v49, 1  ;;  %v1869_v16 = vsel %vm4965_vm5, 0, %v1865_v59 }
 0x2a7   :  { %v1642_v19 = vsel %vm4965_vm5, 0, %v1604_v55  ;;  %v1611_v5 = vor.u32 %v1609_v39, %v1608_v7  ;;  %v1706_v27 = vsel %vm4566_vm2, %v1673_v1, 0  ;;  %v1675_v10 = vor.u32 %v1674_v54, %v1606_v51  ;;  %v4183_v1 = vld [vmem:[%s6217_s5 + $0x1d8] sm:$0xff]  }
 0x2a8   :  { %v3362_v44 = vcombine.low %v5677_v9, %v1642_v19  ;;  %v3364_v4 = vcombine.low %v5784_v58, %v1706_v27  ;;  %v2723_v42 = vor.u32 %v2721_v49, %v2720_v33  ;;  %v1877_v30 = vsel %vm4566_vm2, %v1873_v23, 0  ;;  %v4184_v33 = vld [vmem:[%s6217_s5 + $0x198] sm:$0xff]  }
 0x2a9   :  { %v1643_v48 = vsel %vm4965_vm5, 0, %v1611_v5  ;;  %v1707_v55 = vsel %vm4566_vm2, %v1675_v10, 0  ;;  %v2731_v5 = vor.u32 %v2730_v60, %v2718_v47  ;;  %v6330_v7 = vcombine.low %v5681_v32, %v5690_v46  ;;  %v4171_v32 = vld [vmem:[%s6217_s5 + $0x90] sm:$0xff]   ;;  %v4172_v46 = vld [vmem:[%s6217_s5 + $0x98] sm:$0xff]   ;;  %v4187_v10 = vld [vmem:[%s6217_s5 + $0x1e8] sm:$0xff]  }
 0x2aa   :  { %2211 = vmatmul.mubr.bf16.gmra.mrb[8].mxu1 %v3362_v44  ;;  %v3365_v54 = vcombine.low %v1643_v48, %v1869_v16  ;;  %v5898_v51 = vcombine.low %v1642_v19, %v1643_v48  ;;  %v3367_v9 = vcombine.low %v1707_v55, %v1877_v30  ;;  %v5900_v58 = vcombine.low %v1706_v27, %v1707_v55  ;;  %v4182_v47 = vld [vmem:[%s6217_s5 + $0x190] sm:$0xff]   ;;  %v4185_v19 = vld [vmem:[%s6217_s5 + $0x1e0] sm:$0xff]   ;;  %v4192_v60 = vld [vmem:[%s6217_s5 + $0x1b8] sm:$0xff]  }
 0x2ab   :  { %2218 = vmatprep.mubr.bf16.mxu1 %v3479_v41  ;;  %v2727_v49 = vsel %vm4965_vm5, 0, %v2723_v42  ;;  %v2735_v59 = vsel %vm4566_vm2, %v2731_v5, 0  ;;  %v6332_v41 = vcombine.low %v5708_v35, %v5712_v18  ;;  %v4173_v35 = vld [vmem:[%s6217_s5 + $0xa0] sm:$0xff]   ;;  %v4174_v18 = vld [vmem:[%s6217_s5 + $0xa8] sm:$0xff]   ;;  %v4189_v44 = vld [vmem:[%s6217_s5 + $0x1f0] sm:$0xff]  }
 0x2ac   :  { %v5904_v39 = vcombine.low %v1869_v16, %v2727_v49  ;;  %v5909_v23 = vcombine.low %v1877_v30, %v2735_v59  ;;  %v4186_v27 = vld [vmem:[%s6217_s5 + $0x1a0] sm:$0xff]   ;;  %v4191_v42 = vld [vmem:[%s6217_s5 + $0x1f8] sm:$0xff]   ;;  %v4194_v16 = vld [vmem:[%s6217_s5 + $0x208] sm:$0xff]   ;;  %v6336_v30 = vpack.c.bf16 %v5432_v52, %v5394_v15 }
 0x2ad   :  { %2597 = vmatmul.mubr.bf16.gmra.mrb[60].mxu0 %v5686_v22  ;;  %v4193_v48 = vld [vmem:[%s6217_s5 + $0x200] sm:$0xff]   ;;  %v4196_v55 = vld [vmem:[%s6217_s5 + $0x218] sm:$0xff]  }
 0x2ae   :  { %2604 = vmatprep.mubr.bf16.mxu0 %v5878_v56 }
 0x2b2   :  { %2219 = vmatmul.mubr.bf16.gmra.mrb[12].mxu1 %v3365_v54 }
 0x2b3   :  { %3901 = vmatprep.mubr.bf16.mxu1 %v6330_v7 }
 0x2b5   :  { %2605 = vmatmul.mubr.bf16.gmra.mrb[64].mxu0 %v5898_v51 }
 0x2ba   :  { %3902 = vmatmul.mubr.bf16.vlgmr.msra.gmra.mrb[16].mxu1 %v6331_v13 }
 0x2bb   :  { %3918 = vmatpush3.bf16.msra.mxu1 %v5849_v3  ;;  %3905 = vmatprep.mubr.bf16.mxu1 %v6332_v41  ;;  %v4181_v3 = vld [vmem:[%s6217_s5 + $0x1d0] sm:$0xff]  }
 0x2bc   :  { %3919 = vmatprep.subr.bf16.mxu1 %v4170_v24 }
 0x2bf   :  { %3920 = vmatpush3.bf16.msra.mxu1 %v4170_v24 }
 0x2c0   :  { %3921 = vmatprep.subr.bf16.mxu1 %v4171_v32 }
 0x2c2   :  { %3906 = vmatmul.mubr.bf16.gmra.mrb[20].mxu1 %v6333_v61 }
 0x2c3   :  { %3922 = vmatpush3.bf16.msra.mxu1 %v4171_v32  ;;  %3909 = vmatprep.mubr.bf16.mxu1 %v6334_v43 }
 0x2c4   :  { %3923 = vmatprep.subr.bf16.mxu1 %v4172_v46 }
 0x2c7   :  { %3924 = vmatpush3.bf16.msra.mxu1 %v4172_v46 }
 0x2c8   :  { %3925 = vmatprep.subr.bf16.mxu1 %v4173_v35 }
 0x2ca   :  { %3910 = vmatmul.mubr.bf16.gmra.mrb[24].mxu1 %v6335_v63 }
 0x2cb   :  { %3926 = vmatpush3.bf16.msra.mxu1 %v4173_v35  ;;  %3913 = vmatprep.mubr.bf16.mxu1 %v3364_v4  ;;  %v4190_v4 = vld [vmem:[%s6217_s5 + $0x1b0] sm:$0xff]  }
 0x2cc   :  { %3927 = vmatprep.subr.bf16.mxu1 %v4174_v18 }
 0x2cf   :  { %3928 = vmatpush3.bf16.msra.mxu1 %v4174_v18 }
 0x2d0   :  { %3929 = vmatprep.subr.bf16.mxu1 %v4175_v8 }
 0x2d2   :  { %3914 = vmatmul.mubr.bf16.gmra.mrb[28].mxu1 %v3367_v9  ;;  %v6337_v9 = vld [vmem:[#allocation3_spill] sm:$0xff] }
 0x2d3   :  { %3930 = vmatpush3.bf16.msra.mxu1 %v4175_v8  ;;  %3933 = vmatprep.mubr.bf16.mxu1 %v5816_v28  ;;  %v4180_v28 = vld [vmem:[%s6217_s5 + $0x188] sm:$0xff]  }
 0x2d4   :  { %3931 = vmatprep.subr.bf16.mxu1 %v4176_v45 }
 0x2d7   :  { %3932 = vmatpush3.bf16.msra.mxu1 %v4176_v45 }
 0x2d8   :  { %3733 = vmatprep.subr.bf16.mxu1 %v4177_v25 }
 0x2da   :  { %3934 = vmatmul.mubr.bf16.vlgmr.msra.gmra.mrb[16].mxu1 %v5704_v40 }
 0x2db   :  { %3734 = vmatpush3.bf16.msra.mxu1 %v4178_v34  ;;  %3937 = vmatprep.mubr.bf16.mxu1 %v5790_v36 }
 0x2dc   :  { %3735 = vmatprep.subr.bf16.mxu1 %v4179_v6 }
 0x2df   :  { %3736 = vmatpush3.bf16.msra.mxu1 %v4180_v28 }
 0x2e0   :  { %3737 = vmatprep.subr.bf16.mxu1 %v4181_v3 }
 0x2e2   :  { %3938 = vmatmul.mubr.bf16.gmra.mrb[20].mxu1 %v5794_v11 }
 0x2e3   :  { %3738 = vmatpush3.bf16.msra.mxu1 %v4182_v47  ;;  %3941 = vmatprep.mubr.bf16.mxu1 %v5830_v29  ;;  %v4188_v29 = vld [vmem:[%s6217_s5 + $0x1a8] sm:$0xff]  }
 0x2e4   :  { %3739 = vmatprep.subr.bf16.mxu1 %v4183_v1 }
 0x2e7   :  { %3740 = vmatpush3.bf16.msra.mxu1 %v4184_v33 }
 0x2e8   :  { %3741 = vmatprep.subr.bf16.mxu1 %v4185_v19 }
 0x2ea   :  { %3942 = vmatmul.mubr.bf16.gmra.mrb[24].mxu1 %v5800_v21 }
 0x2eb   :  { %3742 = vmatpush3.bf16.msra.mxu1 %v4186_v27  ;;  %3945 = vmatprep.mubr.bf16.mxu1 %v5806_v37 }
 0x2ec   :  { %3743 = vmatprep.subr.bf16.mxu1 %v4187_v10 }
 0x2ef   :  { %3744 = vmatpush3.bf16.msra.mxu1 %v4188_v29 }
 0x2f0   :  { %3745 = vmatprep.subr.bf16.mxu1 %v4189_v44 }
 0x2f2   :  { %3946 = vmatmul.mubr.bf16.gmra.mrb[28].mxu1 %v5900_v58 }
 0x2f3   :  { %3746 = vmatpush3.bf16.msra.mxu1 %v4190_v4  ;;  %2984 = vmatprep.mubr.bf16.mxu1 %v5582_v12  ;;  %v4195_v12 = vld [vmem:[%s6217_s5 + $0x210] sm:$0xff]  }
 0x2f4   :  { %3747 = vmatprep.subr.bf16.mxu1 %v4191_v42 }
 0x2f7   :  { %3748 = vmatpush3.bf16.msra.mxu1 %v4192_v60 }
 0x2f8   :  { %3949 = vmatprep.subr.bf16.mxu1 %v4193_v48 }
 0x2fa   :  { %2985 = vmatmul.mubr.bf16.vlgmr.msra.gmra.mrb[32].mxu1 %v5586_v2  ;;  %v4197_v2 = vld [vmem:[%s6217_s5 + $0x220] sm:$0xff]  }
 0x2fb   :  { %3950 = vmatpush3.bf16.msra.mxu1 %v4193_v48  ;;  %2992 = vmatprep.mubr.bf16.mxu1 %v5599_v20  ;;  %v4198_v20 = vld [vmem:[%s6217_s5 + $0x228] sm:$0xff]  }
 0x2fc   :  { %3951 = vmatprep.subr.bf16.mxu1 %v4194_v16 }
 0x2ff   :  { %3952 = vmatpush3.bf16.msra.mxu1 %v4194_v16 }
 0x300   :  { %3953 = vmatprep.subr.bf16.mxu1 %v4195_v12 }
 0x302   :  { %2993 = vmatmul.mubr.bf16.gmra.mrb[36].mxu1 %v5602_v0  ;;  %v4199_v0 = vld [vmem:[%s6217_s5 + $0x230] sm:$0xff]  }
 0x303   :  { %3000 = vmatprep.mubr.bf16.mxu1 %v5611_v38  ;;  %3954 = vmatpush3.bf16.msra.mxu1 %v4195_v12  ;;  %v4200_v38 = vld [vmem:[%s6217_s5 + $0x238] sm:$0xff]  }
 0x304   :  { %3955 = vmatprep.subr.bf16.mxu1 %v4196_v55 }
 0x307   :  { %3956 = vmatpush3.bf16.msra.mxu1 %v4196_v55 }
 0x308   :  { %3957 = vmatprep.subr.bf16.mxu1 %v4197_v2 }
 0x30a   :  { %3001 = vmatmul.mubr.bf16.gmra.mrb[40].mxu1 %v5613_v31 }
 0x30b   :  { %3008 = vmatprep.mubr.bf16.mxu1 %v6336_v30  ;;  %3958 = vmatpush3.bf16.msra.mxu1 %v4197_v2 }
 0x30c   :  { %3959 = vmatprep.subr.bf16.mxu1 %v4198_v20 }
 0x30f   :  { %3960 = vmatpush3.bf16.msra.mxu1 %v4198_v20 }
 0x310   :  { %3961 = vmatprep.subr.bf16.mxu1 %v4199_v0 }
 0x312   :  { %3009 = vmatmul.mubr.bf16.gmra.mrb[44].mxu1 %v5839_v62 }
 0x313   :  { %3016 = vmatprep.mubr.bf16.mxu1 %v5622_v26  ;;  %3962 = vmatpush3.bf16.msra.mxu1 %v4199_v0 }
 0x314   :  { %3963 = vmatprep.subr.bf16.mxu1 %v4200_v38 }
 0x317   :  { %3964 = vmatpush3.bf16.msra.mxu1 %v4200_v38 }
 0x31a   :  { %3017 = vmatmul.mubr.bf16.gmra.mrb[48].mxu1 %v5624_v17 }
 0x31b   :  { %3024 = vmatprep.mubr.bf16.mxu1 %v5631_v14 }
 0x322   :  { %3025 = vmatmul.mubr.bf16.gmra.mrb[52].mxu1 %v5686_v22 }
 0x323   :  { %3032 = vmatprep.mubr.bf16.mxu1 %v5878_v56 }
 0x32a   :  { %3033 = vmatmul.mubr.bf16.gmra.mrb[56].mxu1 %v5898_v51 }
 0x32b   :  { %3040 = vmatprep.mubr.bf16.mxu1 %v3489_v53 }
 0x32e   :  { %v3589_v15 = vpop.f32.mrb[20].mxu0 }
 0x32f   :  { %v3590_v52 = vpop.f32.mrb[21].mxu0 }
 0x330   :  { %v3591_v31 = vadd.f32 %v3590_v52, %v3589_v15  ;;  %v3592_v26 = vpop.f32.mrb[22].mxu0 }
 0x331   :  { %v3593_v62 = vpop.f32.mrb[23].mxu0 }
 0x332   :  { %v3594_v54 = vadd.f32 %v3593_v62, %v3592_v26  ;;  %3041 = vmatmul.mubr.bf16.gmra.mrb[60].mxu1 %v5904_v39 }
 0x333   :  { %3965 = vmatprep.mubr.bf16.mxu1 %v5704_v40 }
 0x338   :  { %v3595_v17 = vpop.f32.mrb[24].mxu0 }
 0x339   :  { %v3596_v14 = vpop.f32.mrb[25].mxu0 }
 0x33a   :  { %3966 = vmatmul.mubr.bf16.vlgmr.msra.gmra.mrb[16].mxu1 %v5790_v36  ;;  %v3597_v22 = vadd.f32 %v3596_v14, %v3595_v17  ;;  %v3598_v56 = vpop.f32.mrb[26].mxu0 }
 0x33b   :  { %3969 = vmatprep.mubr.bf16.mxu1 %v5794_v11  ;;  %v3599_v57 = vpop.f32.mrb[27].mxu0 }
 0x33c   :  { %v3600_v50 = vadd.f32 %v3599_v57, %v3598_v56 }
 0x340   :  { %v3601_v53 = vpop.f32.mrb[28].mxu0 }
 0x341   :  { %v3602_v51 = vpop.f32.mrb[29].mxu0 }
 0x342   :  { %3970 = vmatmul.mubr.bf16.gmra.mrb[20].mxu1 %v6337_v9  ;;  %v3603_v49 = vadd.f32 %v3602_v51, %v3601_v53  ;;  %v3604_v5 = vpop.f32.mrb[30].mxu0 }
 0x343   :  { %v3613_v59 = vpop.f32.mrb[0].mxu1  ;;  %3973 = vmatprep.mubr.bf16.mxu1 %v5800_v21  ;;  %v3605_v40 = vpop.f32.mrb[31].mxu0 }
 0x344   :  { %v3614_v39 = vpop.f32.mrb[1].mxu1  ;;  %v3606_v7 = vadd.f32 %v3605_v40, %v3604_v5 }
 0x345   :  { %v3615_v24 = vadd.f32 %v3614_v39, %v3613_v59  ;;  %v3616_v36 = vpop.f32.mrb[2].mxu1 }
 0x346   :  { %v3617_v13 = vpop.f32.mrb[3].mxu1 }
 0x347   :  { %v3618_v41 = vadd.f32 %v3617_v13, %v3616_v36 }
 0x348   :  { %v3607_v32 = vpop.f32.mrb[32].mxu0 }
 0x349   :  { %v3608_v11 = vpop.f32.mrb[33].mxu0 }
 0x34a   :  { %3974 = vmatmul.mubr.bf16.gmra.mrb[24].mxu1 %v5806_v37  ;;  %v3609_v46 = vadd.f32 %v3608_v11, %v3607_v32  ;;  %v3610_v61 = vpop.f32.mrb[34].mxu0 }
 0x34b   :  { %v3619_v43 = vpop.f32.mrb[4].mxu1  ;;  %3977 = vmatprep.mubr.bf16.mxu1 %v5900_v58  ;;  %v3611_v35 = vpop.f32.mrb[35].mxu0 }
 0x34c   :  { %v3620_v18 = vpop.f32.mrb[5].mxu1  ;;  %v3612_v63 = vadd.f32 %v3611_v35, %v3610_v61 }
 0x34d   :  { %v3621_v21 = vadd.f32 %v3620_v18, %v3619_v43  ;;  %v3622_v8 = vpop.f32.mrb[6].mxu1 }
 0x34e   :  { %v3623_v45 = vpop.f32.mrb[7].mxu1 }
 0x34f   :  { %v3624_v25 = vadd.f32 %v3623_v45, %v3622_v8 }
 0x350   :  { %v3669_v34 = vpop.f32.mrb[36].mxu0 }
 0x351   :  { %v3670_v6 = vpop.f32.mrb[37].mxu0 }
 0x352   :  { %3978 = vmatmul.mubr.bf16.gmra.mrb[28].mxu1 %v5909_v23  ;;  %v3671_v28 = vadd.f32 %v3670_v6, %v3669_v34  ;;  %v3672_v3 = vpop.f32.mrb[38].mxu0 }
 0x353   :  { %v3673_v47 = vpop.f32.mrb[39].mxu0 }
 0x354   :  { %v6061_v37 = vadd.f32 %v3671_v28, %v3591_v31  ;;  %v3674_v1 = vadd.f32 %v3673_v47, %v3672_v3 }
 0x356   :  { %v6063_v33 = vadd.f32 %v3674_v1, %v3594_v54 }
 0x358   :  { %v3675_v58 = vpop.f32.mrb[40].mxu0 }
 0x359   :  { %v3676_v19 = vpop.f32.mrb[41].mxu0 }
 0x35a   :  { %v3677_v27 = vadd.f32 %v3676_v19, %v3675_v58  ;;  %v3678_v10 = vpop.f32.mrb[42].mxu0 }
 0x35b   :  { %v3679_v29 = vpop.f32.mrb[43].mxu0 }
 0x35c   :  { %v6065_v44 = vadd.f32 %v3677_v27, %v3597_v22  ;;  %v3680_v4 = vadd.f32 %v3679_v29, %v3678_v10 }
 0x35e   :  { %v6067_v42 = vadd.f32 %v3680_v4, %v3600_v50 }
 0x360   :  { %v3681_v60 = vpop.f32.mrb[44].mxu0 }
 0x361   :  { %v3682_v23 = vpop.f32.mrb[45].mxu0 }
 0x362   :  { %v3683_v48 = vadd.f32 %v3682_v23, %v3681_v60  ;;  %v3684_v16 = vpop.f32.mrb[46].mxu0 }
 0x363   :  { %v3685_v12 = vpop.f32.mrb[47].mxu0 }
 0x364   :  { %v6069_v55 = vadd.f32 %v3683_v48, %v3603_v49  ;;  %v3686_v2 = vadd.f32 %v3685_v12, %v3684_v16 }
 0x366   :  { %v6071_v20 = vadd.f32 %v3686_v2, %v3606_v7 }
 0x368   :  { %v3687_v30 = vpop.f32.mrb[48].mxu0 }
 0x369   :  { %v3688_v0 = vpop.f32.mrb[49].mxu0 }
 0x36a   :  { %v3689_v38 = vadd.f32 %v3688_v0, %v3687_v30  ;;  %v3690_v15 = vpop.f32.mrb[50].mxu0 }
 0x36b   :  { %v3691_v52 = vpop.f32.mrb[51].mxu0 }
 0x36c   :  { %v6073_v31 = vadd.f32 %v3689_v38, %v3609_v46  ;;  %v3692_v26 = vadd.f32 %v3691_v52, %v3690_v15 }
 0x36e   :  { %v6075_v62 = vadd.f32 %v3692_v26, %v3612_v63 }
 0x370   :  { %v3693_v54 = vpop.f32.mrb[52].mxu0 }
 0x371   :  { %v3694_v17 = vpop.f32.mrb[53].mxu0 }
 0x372   :  { %v3695_v14 = vadd.f32 %v3694_v17, %v3693_v54  ;;  %v3696_v22 = vpop.f32.mrb[54].mxu0 }
 0x373   :  { %v3697_v56 = vpop.f32.mrb[55].mxu0 }
 0x374   :  { %v6077_v57 = vadd.f32 %v3695_v14, %v3615_v24  ;;  %v3698_v50 = vadd.f32 %v3697_v56, %v3696_v22 }
 0x376   :  { %v6079_v53 = vadd.f32 %v3698_v50, %v3618_v41 }
 0x378   :  { %v3699_v51 = vpop.f32.mrb[56].mxu0 }
 0x379   :  { %v3700_v9 = vpop.f32.mrb[57].mxu0 }
 0x37a   :  { %v3701_v49 = vadd.f32 %v3700_v9, %v3699_v51  ;;  %v3702_v5 = vpop.f32.mrb[58].mxu0 }
 0x37b   :  { %v3703_v59 = vpop.f32.mrb[59].mxu0 }
 0x37c   :  { %v6081_v40 = vadd.f32 %v3701_v49, %v3621_v21  ;;  %v3704_v39 = vadd.f32 %v3703_v59, %v3702_v5 }
 0x37d   :  { %v3625_v7 = vpop.f32.mrb[8].mxu1 }
 0x37e   :  { %v3626_v36 = vpop.f32.mrb[9].mxu1  ;;  %v6083_v13 = vadd.f32 %v3704_v39, %v3624_v25 }
 0x37f   :  { %v3627_v32 = vadd.f32 %v3626_v36, %v3625_v7  ;;  %v3628_v11 = vpop.f32.mrb[10].mxu1 }
 0x380   :  { %v3629_v46 = vpop.f32.mrb[11].mxu1  ;;  %v3705_v24 = vpop.f32.mrb[60].mxu0 }
 0x381   :  { %v3630_v61 = vadd.f32 %v3629_v46, %v3628_v11  ;;  %v3706_v43 = vpop.f32.mrb[61].mxu0 }
 0x382   :  { %v3707_v41 = vadd.f32 %v3706_v43, %v3705_v24  ;;  %v3708_v35 = vpop.f32.mrb[62].mxu0 }
 0x383   :  { %v3709_v18 = vpop.f32.mrb[63].mxu0 }
 0x384   :  { %v6085_v63 = vadd.f32 %v3707_v41, %v3627_v32  ;;  %v3710_v8 = vadd.f32 %v3709_v18, %v3708_v35 }
 0x385   :  { %v3631_v45 = vpop.f32.mrb[12].mxu1 }
 0x386   :  { %v3632_v21 = vpop.f32.mrb[13].mxu1  ;;  %v6087_v34 = vadd.f32 %v3710_v8, %v3630_v61 }
 0x387   :  { %v3633_v6 = vadd.f32 %v3632_v21, %v3631_v45  ;;  %v3634_v28 = vpop.f32.mrb[14].mxu1 }
 0x388   :  { %v3635_v25 = vpop.f32.mrb[15].mxu1  ;;  %v3711_v3 = vpop.f32.mrb[64].mxu0 }
 0x389   :  { %v3636_v47 = vadd.f32 %v3635_v25, %v3634_v28  ;;  %v3712_v1 = vpop.f32.mrb[65].mxu0 }
 0x38a   :  { %v3713_v58 = vadd.f32 %v3712_v1, %v3711_v3  ;;  %v3714_v19 = vpop.f32.mrb[66].mxu0 }
 0x38b   :  { %v3715_v27 = vpop.f32.mrb[67].mxu0 }
 0x38c   :  { %v6089_v10 = vadd.f32 %v3713_v58, %v3633_v6  ;;  %v3716_v29 = vadd.f32 %v3715_v27, %v3714_v19 }
 0x38e   :  { %v6091_v4 = vadd.f32 %v3716_v29, %v3636_v47 }
 0x3cd   :  { %v3749_v60 = vpop.f32.mrb[32].mxu1 }
 0x3ce   :  { %v3750_v23 = vpop.f32.mrb[33].mxu1 }
 0x3cf   :  { %v3751_v48 = vadd.f32 %v3750_v23, %v3749_v60  ;;  %v3752_v16 = vpop.f32.mrb[34].mxu1 }
 0x3d0   :  { %v3753_v12 = vpop.f32.mrb[35].mxu1 }
 0x3d1   :  { %v3754_v2 = vadd.f32 %v3753_v12, %v3752_v16  ;;  %v6094_v30 = vadd.f32 %v6061_v37, %v3751_v48 }
 0x3d3   :  { %v6097_v0 = vadd.f32 %v6063_v33, %v3754_v2 }
 0x3d5   :  { %v3755_v38 = vpop.f32.mrb[36].mxu1 }
 0x3d6   :  { %v3756_v15 = vpop.f32.mrb[37].mxu1 }
 0x3d7   :  { %v3757_v52 = vadd.f32 %v3756_v15, %v3755_v38  ;;  %v3758_v26 = vpop.f32.mrb[38].mxu1  ;;  %v6143_v38 = vld [vmem:[%s6221_s7] ss:$0 sm:$0xff] }
 0x3d8   :  { %v3759_v54 = vpop.f32.mrb[39].mxu1 }
 0x3d9   :  { %v3760_v17 = vadd.f32 %v3759_v54, %v3758_v26  ;;  %v3998_v14 = vadd.f32 %v6065_v44, %v3757_v52 }
 0x3db   :  { %v4004_v22 = vadd.f32 %v6067_v42, %v3760_v17 }
 0x3dd   :  { %v3761_v56 = vpop.f32.mrb[40].mxu1 }
 0x3de   :  { %v3762_v50 = vpop.f32.mrb[41].mxu1 }
 0x3df   :  { %v3763_v51 = vadd.f32 %v3762_v50, %v3761_v56  ;;  %v3764_v9 = vpop.f32.mrb[42].mxu1 }
 0x3e0   :  { %v3765_v49 = vpop.f32.mrb[43].mxu1 }
 0x3e1   :  { %v3766_v37 = vadd.f32 %v3765_v49, %v3764_v9  ;;  %v6102_v5 = vadd.f32 %v6069_v55, %v3763_v51 }
 0x3e3   :  { %v6105_v33 = vadd.f32 %v6071_v20, %v3766_v37 }
 0x3e5   :  { %v3767_v59 = vpop.f32.mrb[44].mxu1 }
 0x3e6   :  { %v3768_v39 = vpop.f32.mrb[45].mxu1 }
 0x3e7   :  { %v3769_v7 = vadd.f32 %v3768_v39, %v3767_v59  ;;  %v3770_v36 = vpop.f32.mrb[46].mxu1 }
 0x3e8   :  { %v3771_v32 = vpop.f32.mrb[47].mxu1 }
 0x3e9   :  { %v3772_v44 = vadd.f32 %v3771_v32, %v3770_v36  ;;  %v4010_v42 = vadd.f32 %v6073_v31, %v3769_v7 }
 0x3eb   :  { %v6109_v11 = vadd.f32 %v6075_v62, %v3772_v44 }
 0x3ed   :  { %v3773_v46 = vpop.f32.mrb[48].mxu1 }
 0x3ee   :  { %v3774_v24 = vpop.f32.mrb[49].mxu1 }
 0x3ef   :  { %v3775_v61 = vadd.f32 %v3774_v24, %v3773_v46  ;;  %v3776_v43 = vpop.f32.mrb[50].mxu1 }
 0x3f0   :  { %v3777_v55 = vpop.f32.mrb[51].mxu1 }
 0x3f1   :  { %v3778_v41 = vadd.f32 %v3777_v55, %v3776_v43  ;;  %v6112_v20 = vadd.f32 %v6077_v57, %v3775_v61 }
 0x3f3   :  { %v6115_v35 = vadd.f32 %v6079_v53, %v3778_v41 }
 0x3f5   :  { %v3779_v18 = vpop.f32.mrb[52].mxu1 }
 0x3f6   :  { %v3780_v8 = vpop.f32.mrb[53].mxu1 }
 0x3f7   :  { %v3781_v45 = vadd.f32 %v3780_v8, %v3779_v18  ;;  %v3782_v21 = vpop.f32.mrb[54].mxu1 }
 0x3f8   :  { %v3783_v31 = vpop.f32.mrb[55].mxu1 }
 0x3f9   :  { %v3784_v6 = vadd.f32 %v3783_v31, %v3782_v21  ;;  %v6118_v62 = vadd.f32 %v6081_v40, %v3781_v45 }
 0x3fb   :  { %v6121_v28 = vadd.f32 %v6083_v13, %v3784_v6 }
 0x3fd   :  { %v3785_v25 = vpop.f32.mrb[56].mxu1 }
 0x3fe   :  { %v3786_v3 = vpop.f32.mrb[57].mxu1 }
 0x3ff   :  { %v3787_v47 = vadd.f32 %v3786_v3, %v3785_v25  ;;  %v3788_v57 = vpop.f32.mrb[58].mxu1 }
 0x400   :  { %v3789_v1 = vpop.f32.mrb[59].mxu1 }
 0x401   :  { %v3790_v58 = vadd.f32 %v3789_v1, %v3788_v57  ;;  %v6124_v53 = vadd.f32 %v6085_v63, %v3787_v47  ;;  %v6138_v63 = vld [vmem:[%s6220_s6] ss:$0 sm:$0xff] }
 0x403   :  { %v6127_v19 = vadd.f32 %v6087_v34, %v3790_v58 }
 0x405   :  { %v3791_v27 = vpop.f32.mrb[60].mxu1 }
 0x406   :  { %v3792_v29 = vpop.f32.mrb[61].mxu1 }
 0x407   :  { %v3793_v60 = vadd.f32 %v3792_v29, %v3791_v27  ;;  %v3794_v40 = vpop.f32.mrb[62].mxu1 }
 0x408   :  { %v3795_v23 = vpop.f32.mrb[63].mxu1 }
 0x409   :  { %v3796_v48 = vadd.f32 %v3795_v23, %v3794_v40  ;;  %v6130_v13 = vadd.f32 %v6089_v10, %v3793_v60 }
 0x40b   :  { %v6133_v16 = vadd.f32 %v6091_v4, %v3796_v48 }
 0x40d   :  { %v3967_v12 = vpop.f32.mrb[16].mxu1 }
 0x40e   :  { %v3999_v34 = vadd.f32 %v3998_v14, %v3967_v12  ;;  %v3083_v2 = vpop.f32.mrb[17].mxu1 }
 0x40f   :  { %v4002_v15 = vadd.f32 %v6094_v30, %v3083_v2  ;;  %v3968_v10 = vpop.f32.mrb[18].mxu1 }
 0x410   :  { %v3171_v52 = vmul.f32 %v3999_v34, %v6138_v63  ;;  %v4005_v4 = vadd.f32 %v4004_v22, %v3968_v10  ;;  %v3086_v26 = vpop.f32.mrb[19].mxu1 }
 0x411   :  { %v3169_v54 = vmul.f32 %v4002_v15, %v6138_v63  ;;  %v4008_v17 = vadd.f32 %v6097_v0, %v3086_v26 }
 0x412   :  { %v3194_v56 = vadd.f32 %v6143_v38, %v3171_v52  ;;  %v3172_v14 = vmul.f32 %v4005_v4, %v6138_v63 }
 0x413   :  { %v3192_v50 = vadd.f32 %v6143_v38, %v3169_v54  ;;  %v3170_v51 = vmul.f32 %v4008_v17, %v6138_v63 }
 0x414   :  { %v3195_v9 = vadd.f32 %v6143_v38, %v3172_v14  ;;  %v3210_v37 = vmax.f32 %v3194_v56, 0.0 }
 0x415   :  { %v3193_v30 = vadd.f32 %v6143_v38, %v3170_v51  ;;  %v3971_v49 = vpop.f32.mrb[20].mxu1  ;;  %v3208_v7 = vmax.f32 %v3192_v50, 0.0 }
 0x416   :  { %v3211_v22 = vmax.f32 %v3195_v9, 0.0  ;;  %v4011_v59 = vadd.f32 %v4010_v42, %v3971_v49  ;;  %v3099_v39 = vpop.f32.mrb[21].mxu1 }
 0x417   :  { %v3209_v36 = vmax.f32 %v3193_v30, 0.0  ;;  %v4014_v0 = vadd.f32 %v6102_v5, %v3099_v39  ;;  %v3972_v32 = vpop.f32.mrb[22].mxu1 }
 0x418   :  { %v3498_v44 = vpack.c.bf16 %v3211_v22, %v3210_v37  ;;  %v3175_v46 = vmul.f32 %v4011_v59, %v6138_v63  ;;  %v4017_v24 = vadd.f32 %v6109_v11, %v3972_v32  ;;  %v3102_v61 = vpop.f32.mrb[23].mxu1 }
 0x419   :  { %v3493_v43 = vpack.c.bf16 %v3209_v36, %v3208_v7  ;;  %v3173_v55 = vmul.f32 %v4014_v0, %v6138_v63  ;;  %v4020_v41 = vadd.f32 %v6105_v33, %v3102_v61 }
 0x41a   :  { %3530 = vst [vmem:[%s6222_s8 + $0x8] sm:$0xff] %v3498_v44   ;;  %v3198_v42 = vadd.f32 %v6143_v38, %v3175_v46  ;;  %v3176_v5 = vmul.f32 %v4017_v24, %v6138_v63 }
 0x41b   :  { %3494 = vst [vmem:[%s6222_s8] sm:$0xff] %v3493_v43   ;;  %v3196_v11 = vadd.f32 %v6143_v38, %v3173_v55  ;;  %v3174_v18 = vmul.f32 %v4020_v41, %v6138_v63 }
 0x41c   :  { %v3199_v8 = vadd.f32 %v6143_v38, %v3176_v5  ;;  %v3214_v21 = vmax.f32 %v3198_v42, 0.0 }
 0x41d   :  { %v3197_v33 = vadd.f32 %v6143_v38, %v3174_v18  ;;  %v3975_v45 = vpop.f32.mrb[24].mxu1  ;;  %v3212_v3 = vmax.f32 %v3196_v11, 0.0 }
 0x41e   :  { %v3215_v31 = vmax.f32 %v3199_v8, 0.0  ;;  %v4023_v6 = vadd.f32 %v6118_v62, %v3975_v45  ;;  %v3115_v25 = vpop.f32.mrb[25].mxu1 }
 0x41f   :  { %v3213_v47 = vmax.f32 %v3197_v33, 0.0  ;;  %v4026_v57 = vadd.f32 %v6112_v20, %v3115_v25  ;;  %v3976_v1 = vpop.f32.mrb[26].mxu1 }
 0x420   :  { %v3508_v58 = vpack.c.bf16 %v3215_v31, %v3214_v21  ;;  %v3179_v27 = vmul.f32 %v4023_v6, %v6138_v63  ;;  %v4029_v29 = vadd.f32 %v6121_v28, %v3976_v1  ;;  %v3118_v60 = vpop.f32.mrb[27].mxu1 }
 0x421   :  { %v3503_v40 = vpack.c.bf16 %v3213_v47, %v3212_v3  ;;  %v3177_v23 = vmul.f32 %v4026_v57, %v6138_v63  ;;  %v4032_v48 = vadd.f32 %v6115_v35, %v3118_v60 }
 0x422   :  { %3532 = vst [vmem:[%s6222_s8 + $0x18] sm:$0xff] %v3508_v58   ;;  %v3202_v62 = vadd.f32 %v6143_v38, %v3179_v27  ;;  %v3180_v20 = vmul.f32 %v4029_v29, %v6138_v63 }
 0x423   :  { %3531 = vst [vmem:[%s6222_s8 + $0x10] sm:$0xff] %v3503_v40   ;;  %v3200_v28 = vadd.f32 %v6143_v38, %v3177_v23  ;;  %v3178_v12 = vmul.f32 %v4032_v48, %v6138_v63 }
 0x424   :  { %v3203_v34 = vadd.f32 %v6143_v38, %v3180_v20  ;;  %v3218_v15 = vmax.f32 %v3202_v62, 0.0 }
 0x425   :  { %v3201_v35 = vadd.f32 %v6143_v38, %v3178_v12  ;;  %v3979_v2 = vpop.f32.mrb[28].mxu1  ;;  %v3216_v26 = vmax.f32 %v3200_v28, 0.0 }
 0x426   :  { %v3219_v10 = vmax.f32 %v3203_v34, 0.0  ;;  %v4035_v52 = vadd.f32 %v6130_v13, %v3979_v2  ;;  %v3131_v4 = vpop.f32.mrb[29].mxu1 }
 0x427   :  { %v3217_v54 = vmax.f32 %v3201_v35, 0.0  ;;  %v4038_v17 = vadd.f32 %v6124_v53, %v3131_v4  ;;  %v3980_v56 = vpop.f32.mrb[30].mxu1 }
 0x428   :  { %v3518_v14 = vpack.c.bf16 %v3219_v10, %v3218_v15  ;;  %v3183_v50 = vmul.f32 %v4035_v52, %v6138_v63  ;;  %v4041_v51 = vadd.f32 %v6133_v16, %v3980_v56  ;;  %v3134_v9 = vpop.f32.mrb[31].mxu1 }
 0x429   :  { %v3513_v30 = vpack.c.bf16 %v3217_v54, %v3216_v26  ;;  %v3181_v49 = vmul.f32 %v4038_v17, %v6138_v63  ;;  %v4044_v37 = vadd.f32 %v6127_v19, %v3134_v9 }
 0x42a   :  { %3534 = vst [vmem:[%s6222_s8 + $0x28] sm:$0xff] %v3518_v14   ;;  %v3206_v13 = vadd.f32 %v6143_v38, %v3183_v50  ;;  %v3184_v53 = vmul.f32 %v4041_v51, %v6138_v63 }
 0x42b   :  { %3533 = vst [vmem:[%s6222_s8 + $0x20] sm:$0xff] %v3513_v30   ;;  %v3204_v16 = vadd.f32 %v6143_v38, %v3181_v49  ;;  %v3182_v22 = vmul.f32 %v4044_v37, %v6138_v63 }
 0x42c   :  { %v3207_v59 = vadd.f32 %v6143_v38, %v3184_v53  ;;  %v3222_v39 = vmax.f32 %v3206_v13, 0.0 }
 0x42d   :  { %v3205_v19 = vadd.f32 %v6143_v38, %v3182_v22  ;;  %v3220_v36 = vmax.f32 %v3204_v16, 0.0 }
 0x42e   :  { %v3223_v7 = vmax.f32 %v3207_v59, 0.0 }
 0x42f   :  { %v3221_v0 = vmax.f32 %v3205_v19, 0.0 }
 0x430   :  { %v3528_v32 = vpack.c.bf16 %v3223_v7, %v3222_v39 }
 0x431   :  { %v3523_v44 = vpack.c.bf16 %v3221_v0, %v3220_v36 }
 0x432   :  { %3536 = vst [vmem:[%s6222_s8 + $0x38] sm:$0xff] %v3528_v32  }
 0x433   :  { %3535 = vst [vmem:[%s6222_s8 + $0x30] sm:$0xff] %v3523_v44  }

</bundles_post_ra>
